<compile_context>
chip_gen: v5e
topology: v5e:2x2
jax: 0.10.0
libtpu: 0.0.40
codegen_flags: <defaults>
</compile_context>

<pallas_src>
import math

import jax
import jax.numpy as jnp
import numpy as np
from jax.experimental import pallas as pl
from jax.experimental.pallas import tpu as pltpu


# ----------------------------------------------------------------------------
# Pallas kernel: batched pre-pass + serial recurrence + (eval) BN + fc.
# ----------------------------------------------------------------------------
def _grud_kernel(
    inp_ref,      # (5, T*B, D): X, X_last_obsv, Mask, Delta, X_mean (broadcast)
    gx_par_ref,   # (2, D): row0 = diag(W_gamma_x), row1 = b_gamma_x
    w_gh_ref,     # (D, H)   gamma_h weight (transposed)
    b_gh_ref,     # (1, H)
    w_x3_ref,     # (D, 3H)  [z|r|h] x-projections (transposed, fused along N)
    w_m3_ref,     # (D, 3H)  [z|r|h] mask-projections
    b3_ref,       # (1, 3H)  [bz|br|bh]
    w_hzr_ref,    # (H, 2H)  [z|r] hidden-state projections (fused along N)
    w_hh_ref,     # (H, H)   candidate hidden-state projection
    bn_ref,       # (4, H): gamma, beta, running_mean, running_var
    w_fc_ref,     # (H, 1)
    b_fc_ref,     # (1, 1)
    out_ref,      # (B, 1)
    dh_scr,       # VMEM (T, B, H)   decay of hidden state per step
    pre_scr,      # VMEM (T, B, 3H)  h-independent gate preactivations per step
):
    T, B, H = dh_scr.shape
    D = inp_ref.shape[-1]

    x_all = inp_ref[0]    # (T*B, D)
    xl_all = inp_ref[1]
    m_all = inp_ref[2]
    d_all = inp_ref[3]
    xm_all = inp_ref[4]

    # ---- pre-pass: everything independent of the hidden state, batched over T*B
    wg_diag = gx_par_ref[0:1, :]                       # (1, D)
    bgx = gx_par_ref[1:2, :]                           # (1, D)
    # FilterLinear with identity filter is diagonal -> elementwise (VPU, no MXU)
    gx = d_all * wg_diag + bgx
    delta_x = jnp.exp(-jnp.maximum(0.0, gx))           # (T*B, D)

    gh = jnp.dot(d_all, w_gh_ref[...], preferred_element_type=jnp.float32) + b_gh_ref[...]
    delta_h = jnp.exp(-jnp.maximum(0.0, gh))           # (T*B, H)

    # imputation (x_mean already broadcast over batch == torch .repeat(B, 1))
    x_imp = m_all * x_all + (1.0 - m_all) * (delta_x * xl_all + (1.0 - delta_x) * xm_all)

    # fused x- and mask-projections (+ biases) for all three gates, all T at once
    pre = (
        jnp.dot(x_imp, w_x3_ref[...], preferred_element_type=jnp.float32)
        + jnp.dot(m_all, w_m3_ref[...], preferred_element_type=jnp.float32)
        + b3_ref[...]
    )                                                  # (T*B, 3H)

    dh_scr[...] = delta_h.reshape(T, B, H)
    pre_scr[...] = pre.reshape(T, B, 3 * H)

    # ---- serial recurrence: only the h-dependent matmuls remain on the chain
    w_hzr = w_hzr_ref[...]    # loop-invariant loads, hoisted
    w_hh = w_hh_ref[...]

    def step(t, h):
        dh = dh_scr[t]                                 # (B, H)
        pg = pre_scr[t]                                # (B, 3H)
        h = dh * h
        zr = jax.nn.sigmoid(
            pg[:, : 2 * H]
            + jnp.dot(h, w_hzr, preferred_element_type=jnp.float32)
        )                                              # (B, 2H)
        z = zr[:, :H]
        r = zr[:, H:]
        h_tilde = jnp.tanh(
            pg[:, 2 * H :]
            + jnp.dot(r * h, w_hh, preferred_element_type=jnp.float32)
        )
        return (1.0 - z) * h + z * h_tilde

    h = jax.lax.fori_loop(0, T, step, jnp.zeros((B, H), jnp.float32), unroll=True)

    # ---- Dropout(eval) = identity; BatchNorm1d (inference); fc projection
    # TODO(synk): training-mode dropout omitted (stochastic); eval-mode identity.
    eps = 1e-5
    gamma = bn_ref[0:1, :]
    beta = bn_ref[1:2, :]
    mean = bn_ref[2:3, :]
    var = bn_ref[3:4, :]
    h_bn = (h - mean) * jax.lax.rsqrt(var + eps) * gamma + beta
    out_ref[...] = (
        jnp.dot(h_bn, w_fc_ref[...], preferred_element_type=jnp.float32) + b_fc_ref[...]
    )


# ----------------------------------------------------------------------------
# Wrapper: input/weight packing + single pallas_call (no grid, all VMEM).
# ----------------------------------------------------------------------------
def grud_forward(X, X_last_obsv, Mask, Delta, X_mean, params):
    """X, X_last_obsv, Mask, Delta: (B, T, D).  X_mean: (1, T, D)."""
    B, T, D = X.shape
    H = params["wzh_t"].shape[0]

    def tm_flat(a):  # (B, T, D) -> time-major, flattened to (T*B, D)
        return jnp.transpose(a, (1, 0, 2)).reshape(T * B, D).astype(jnp.float32)

    xm_b = jnp.broadcast_to(
        jnp.transpose(X_mean, (1, 0, 2)).astype(jnp.float32), (T, B, D)
    ).reshape(T * B, D)

    # one coalesced input slab: X, X_last_obsv, Mask, Delta, X_mean(broadcast)
    inp = jnp.stack(
        [tm_flat(X), tm_flat(X_last_obsv), tm_flat(Mask), tm_flat(Delta), xm_b], axis=0
    )  # (5, T*B, D)

    # packed weights / biases
    gx_par = jnp.concatenate([params["wg_diag"], params["bgx"]], axis=0)            # (2, D)
    w_x3 = jnp.concatenate([params["wzx_t"], params["wrx_t"], params["whx_t"]], axis=1)  # (D, 3H)
    w_m3 = jnp.concatenate([params["wzm_t"], params["wrm_t"], params["whm_t"]], axis=1)  # (D, 3H)
    b_3 = jnp.concatenate([params["bz"], params["br"], params["bh"]], axis=1)       # (1, 3H)
    w_hzr = jnp.concatenate([params["wzh_t"], params["wrh_t"]], axis=1)             # (H, 2H)
    bn_par = jnp.concatenate(
        [params["bn_gamma"], params["bn_beta"], params["bn_mean"], params["bn_var"]], axis=0
    )  # (4, H)

    vmem = pl.BlockSpec(memory_space=pltpu.MemorySpace.VMEM)

    out = pl.pallas_call(
        _grud_kernel,
        out_shape=jax.ShapeDtypeStruct((B, 1), jnp.float32),
        in_specs=[vmem] * 12,
        out_specs=vmem,
        scratch_shapes=[
            pltpu.VMEM((T, B, H), jnp.float32),       # delta_h per step
            pltpu.VMEM((T, B, 3 * H), jnp.float32),   # fused gate preactivations
        ],
    )(
        inp, gx_par, params["wgh_t"], params["bgh"], w_x3, w_m3, b_3,
        w_hzr, params["whh_t"], bn_par, params["wfc_t"], params["bfc"],
    )
    return out


# ----------------------------------------------------------------------------
# Deterministic parameter construction (mirrors the PyTorch __init__ shapes)
# ----------------------------------------------------------------------------
def init_grud_params(key, input_size, hidden_size):
    D, H = input_size, hidden_size
    keys = jax.random.split(key, 16)

    def lin(kw, kb, out_f, in_f):
        stdv = 1.0 / math.sqrt(in_f)
        w = jax.random.uniform(kw, (out_f, in_f), jnp.float32, -stdv, stdv)
        b = jax.random.uniform(kb, (out_f,), jnp.float32, -stdv, stdv)
        return w, b

    # zl / rl / hl : Linear(D + H + D -> H)
    wz, bz = lin(keys[0], keys[1], H, 2 * D + H)
    wr, br = lin(keys[2], keys[3], H, 2 * D + H)
    wh, bh = lin(keys[4], keys[5], H, 2 * D + H)
    # gamma_x_l : FilterLinear(D -> D) with identity filter (element-wise mask on W)
    wgx, bgx = lin(keys[6], keys[7], D, D)
    wgx_eff = jnp.eye(D, dtype=jnp.float32) * wgx
    # gamma_h_l : Linear(D -> H)
    wgh, bgh = lin(keys[8], keys[9], H, D)
    # fc : Linear(H -> 1)
    wfc, bfc = lin(keys[10], keys[11], 1, H)

    def split_zrh(w):
        # torch F.linear: y = x @ w.T ; columns of w are [x | h | mask]
        wx = w[:, :D].T          # (D, H)
        whid = w[:, D:D + H].T   # (H, H)
        wm = w[:, D + H:].T      # (D, H)
        return wx, whid, wm

    wzx_t, wzh_t, wzm_t = split_zrh(wz)
    wrx_t, wrh_t, wrm_t = split_zrh(wr)
    whx_t, whh_t, whm_t = split_zrh(wh)

    params = dict(
        wgx_t=wgx_eff.T, wg_diag=jnp.diagonal(wgx).reshape(1, D), bgx=bgx.reshape(1, D),
        wgh_t=wgh.T, bgh=bgh.reshape(1, H),
        wzx_t=wzx_t, wzh_t=wzh_t, wzm_t=wzm_t, bz=bz.reshape(1, H),
        wrx_t=wrx_t, wrh_t=wrh_t, wrm_t=wrm_t, br=br.reshape(1, H),
        whx_t=whx_t, whh_t=whh_t, whm_t=whm_t, bh=bh.reshape(1, H),
        wfc_t=wfc.T, bfc=bfc.reshape(1, 1),
        # BatchNorm1d default init / fresh running statistics (inference mode)
        bn_gamma=jnp.ones((1, H), jnp.float32),
        bn_beta=jnp.zeros((1, H), jnp.float32),
        bn_mean=jnp.zeros((1, H), jnp.float32),
        bn_var=jnp.ones((1, H), jnp.float32),
    )
    return params


# ----------------------------------------------------------------------------
# Pure-JAX reference (mirrors GRUD.forward / GRUD.step line-by-line)
# ----------------------------------------------------------------------------
def grud_reference(X, X_last_obsv, Mask, Delta, X_mean, params):
    B, T, D = X.shape
    H = params["wzh_t"].shape[0]
    h = jnp.zeros((B, H), jnp.float32)
    for i in range(T):
        x, xl = X[:, i, :], X_last_obsv[:, i, :]
        m, d = Mask[:, i, :], Delta[:, i, :]
        xm = X_mean[:, i, :]  # (1, D)
        gx = d @ params["wgx_t"] + params["bgx"]
        delta_x = jnp.exp(-jnp.maximum(0.0, gx))
        gh = d @ params["wgh_t"] + params["bgh"]
        delta_h = jnp.exp(-jnp.maximum(0.0, gh))
        x = m * x + (1.0 - m) * (delta_x * xl + (1.0 - delta_x) * xm)
        h = delta_h * h
        z = jax.nn.sigmoid(x @ params["wzx_t"] + h @ params["wzh_t"]
                           + m @ params["wzm_t"] + params["bz"])
        r = jax.nn.sigmoid(x @ params["wrx_t"] + h @ params["wrh_t"]
                           + m @ params["wrm_t"] + params["br"])
        hl = (x @ params["whx_t"] + (r * h) @ params["whh_t"]
              + m @ params["whm_t"] + params["bh"])
        h = (1.0 - z) * h + z * jnp.tanh(hl)
    eps = 1e-5
    h_bn = ((h - params["bn_mean"]) / jnp.sqrt(params["bn_var"] + eps)
            * params["bn_gamma"] + params["bn_beta"])
    return h_bn @ params["wfc_t"] + params["bfc"]


if __name__ == "__main__":
    B, T, D, H = 8, 8, 16, 32

    key = jax.random.PRNGKey(0)
    k_par, k_x, k_xl, k_m, k_d, k_xm = jax.random.split(key, 6)

    params = init_grud_params(k_par, D, H)

    X = jax.random.normal(k_x, (B, T, D), jnp.float32)
    X_last_obsv = jax.random.normal(k_xl, (B, T, D), jnp.float32)
    Mask = jax.random.bernoulli(k_m, 0.6, (B, T, D)).astype(jnp.float32)
    Delta = jnp.abs(jax.random.normal(k_d, (B, T, D), jnp.float32))
    X_mean = jax.random.normal(k_xm, (1, T, D), jnp.float32)

    out = grud_forward(X, X_last_obsv, Mask, Delta, X_mean, params)
    out = jax.block_until_ready(out)

    ref = grud_reference(X, X_last_obsv, Mask, Delta, X_mean, params)
    np.testing.assert_allclose(np.asarray(out), np.asarray(ref), rtol=1e-4, atol=1e-4)

    print("KERNEL_OK")
</pallas_src>

<mosaic_0001>
module attributes {stable_mosaic.version = 11 : i64} {
  func.func @_grud_kernel(%arg0: memref<5x64x16xf32, #tpu.memory_space<vmem>>, %arg1: memref<2x16xf32, #tpu.memory_space<vmem>>, %arg2: memref<16x32xf32, #tpu.memory_space<vmem>>, %arg3: memref<1x32xf32, #tpu.memory_space<vmem>>, %arg4: memref<16x96xf32, #tpu.memory_space<vmem>>, %arg5: memref<16x96xf32, #tpu.memory_space<vmem>>, %arg6: memref<1x96xf32, #tpu.memory_space<vmem>>, %arg7: memref<32x64xf32, #tpu.memory_space<vmem>>, %arg8: memref<32x32xf32, #tpu.memory_space<vmem>>, %arg9: memref<4x32xf32, #tpu.memory_space<vmem>>, %arg10: memref<32x1xf32, #tpu.memory_space<vmem>>, %arg11: memref<1x1xf32, #tpu.memory_space<vmem>>, %arg12: memref<8x1xf32, #tpu.memory_space<vmem>>, %arg13: memref<8x8x32xf32, #tpu.memory_space<vmem>>, %arg14: memref<8x8x96xf32, #tpu.memory_space<vmem>>) attributes {dimension_semantics = [], scalar_prefetch = 0 : i64, scratch_operands = 2 : i64, tpu.core_type = #tpu.core_type<tc>} {
    %c0 = arith.constant 0 : index
    %c0_0 = arith.constant 0 : index
    %c0_1 = arith.constant 0 : index
    %0 = vector.load %arg0[%c0, %c0_0, %c0_1] : memref<5x64x16xf32, #tpu.memory_space<vmem>>, vector<1x64x16xf32>
    %1 = vector.shape_cast %0 : vector<1x64x16xf32> to vector<64x16xf32>
    %c1 = arith.constant 1 : index
    %c0_2 = arith.constant 0 : index
    %c0_3 = arith.constant 0 : index
    %2 = vector.load %arg0[%c1, %c0_2, %c0_3] : memref<5x64x16xf32, #tpu.memory_space<vmem>>, vector<1x64x16xf32>
    %3 = vector.shape_cast %2 : vector<1x64x16xf32> to vector<64x16xf32>
    %c2 = arith.constant 2 : index
    %c0_4 = arith.constant 0 : index
    %c0_5 = arith.constant 0 : index
    %4 = vector.load %arg0[%c2, %c0_4, %c0_5] : memref<5x64x16xf32, #tpu.memory_space<vmem>>, vector<1x64x16xf32>
    %5 = vector.shape_cast %4 : vector<1x64x16xf32> to vector<64x16xf32>
    %c3 = arith.constant 3 : index
    %c0_6 = arith.constant 0 : index
    %c0_7 = arith.constant 0 : index
    %6 = vector.load %arg0[%c3, %c0_6, %c0_7] : memref<5x64x16xf32, #tpu.memory_space<vmem>>, vector<1x64x16xf32>
    %7 = vector.shape_cast %6 : vector<1x64x16xf32> to vector<64x16xf32>
    %c4 = arith.constant 4 : index
    %c0_8 = arith.constant 0 : index
    %c0_9 = arith.constant 0 : index
    %8 = vector.load %arg0[%c4, %c0_8, %c0_9] : memref<5x64x16xf32, #tpu.memory_space<vmem>>, vector<1x64x16xf32>
    %9 = vector.shape_cast %8 : vector<1x64x16xf32> to vector<64x16xf32>
    %c0_10 = arith.constant 0 : index
    %c0_11 = arith.constant 0 : index
    %10 = vector.load %arg1[%c0_10, %c0_11] : memref<2x16xf32, #tpu.memory_space<vmem>>, vector<1x16xf32>
    %c1_12 = arith.constant 1 : index
    %c0_13 = arith.constant 0 : index
    %11 = vector.load %arg1[%c1_12, %c0_13] : memref<2x16xf32, #tpu.memory_space<vmem>>, vector<1x16xf32>
    %12 = vector.broadcast %10 : vector<1x16xf32> to vector<64x16xf32>
    %13 = arith.mulf %7, %12 : vector<64x16xf32>
    %14 = vector.broadcast %11 : vector<1x16xf32> to vector<64x16xf32>
    %15 = arith.addf %13, %14 : vector<64x16xf32>
    %cst = arith.constant 0.000000e+00 : f32
    %16 = vector.broadcast %cst : f32 to vector<64x16xf32>
    %17 = arith.maximumf %16, %15 : vector<64x16xf32>
    %cst_14 = arith.constant 0.000000e+00 : f32
    %18 = vector.broadcast %cst_14 : f32 to vector<64x16xf32>
    %19 = arith.subf %18, %17 : vector<64x16xf32>
    %20 = math.exp %19 : vector<64x16xf32>
    %c0_15 = arith.constant 0 : index
    %c0_16 = arith.constant 0 : index
    %21 = vector.load %arg2[%c0_15, %c0_16] : memref<16x32xf32, #tpu.memory_space<vmem>>, vector<16x32xf32>
    %cst_17 = arith.constant dense<0.000000e+00> : vector<64x32xf32>
    %22 = tpu.matmul %7, %21, %cst_17 {dimension_numbers = #tpu.dot_dimension_numbers<[1], [0], [0], [1], [0, 0, 1, 1], [], []>} : vector<64x16xf32>, vector<16x32xf32>, vector<64x32xf32> -> vector<64x32xf32>
    %c0_18 = arith.constant 0 : index
    %c0_19 = arith.constant 0 : index
    %23 = vector.load %arg3[%c0_18, %c0_19] : memref<1x32xf32, #tpu.memory_space<vmem>>, vector<1x32xf32>
    %24 = vector.broadcast %23 : vector<1x32xf32> to vector<64x32xf32>
    %25 = arith.addf %22, %24 : vector<64x32xf32>
    %cst_20 = arith.constant 0.000000e+00 : f32
    %26 = vector.broadcast %cst_20 : f32 to vector<64x32xf32>
    %27 = arith.maximumf %26, %25 : vector<64x32xf32>
    %cst_21 = arith.constant 0.000000e+00 : f32
    %28 = vector.broadcast %cst_21 : f32 to vector<64x32xf32>
    %29 = arith.subf %28, %27 : vector<64x32xf32>
    %30 = math.exp %29 : vector<64x32xf32>
    %31 = arith.mulf %5, %1 : vector<64x16xf32>
    %cst_22 = arith.constant 1.000000e+00 : f32
    %32 = vector.broadcast %cst_22 : f32 to vector<64x16xf32>
    %33 = arith.subf %32, %5 : vector<64x16xf32>
    %34 = arith.mulf %20, %3 : vector<64x16xf32>
    %cst_23 = arith.constant 1.000000e+00 : f32
    %35 = vector.broadcast %cst_23 : f32 to vector<64x16xf32>
    %36 = arith.subf %35, %20 : vector<64x16xf32>
    %37 = arith.mulf %36, %9 : vector<64x16xf32>
    %38 = arith.addf %34, %37 : vector<64x16xf32>
    %39 = arith.mulf %33, %38 : vector<64x16xf32>
    %40 = arith.addf %31, %39 : vector<64x16xf32>
    %c0_24 = arith.constant 0 : index
    %c0_25 = arith.constant 0 : index
    %41 = vector.load %arg4[%c0_24, %c0_25] : memref<16x96xf32, #tpu.memory_space<vmem>>, vector<16x96xf32>
    %cst_26 = arith.constant dense<0.000000e+00> : vector<64x96xf32>
    %42 = tpu.matmul %40, %41, %cst_26 {dimension_numbers = #tpu.dot_dimension_numbers<[1], [0], [0], [1], [0, 0, 1, 1], [], []>} : vector<64x16xf32>, vector<16x96xf32>, vector<64x96xf32> -> vector<64x96xf32>
    %c0_27 = arith.constant 0 : index
    %c0_28 = arith.constant 0 : index
    %43 = vector.load %arg5[%c0_27, %c0_28] : memref<16x96xf32, #tpu.memory_space<vmem>>, vector<16x96xf32>
    %cst_29 = arith.constant dense<0.000000e+00> : vector<64x96xf32>
    %44 = tpu.matmul %5, %43, %cst_29 {dimension_numbers = #tpu.dot_dimension_numbers<[1], [0], [0], [1], [0, 0, 1, 1], [], []>} : vector<64x16xf32>, vector<16x96xf32>, vector<64x96xf32> -> vector<64x96xf32>
    %45 = arith.addf %42, %44 : vector<64x96xf32>
    %c0_30 = arith.constant 0 : index
    %c0_31 = arith.constant 0 : index
    %46 = vector.load %arg6[%c0_30, %c0_31] : memref<1x96xf32, #tpu.memory_space<vmem>>, vector<1x96xf32>
    %47 = vector.broadcast %46 : vector<1x96xf32> to vector<64x96xf32>
    %48 = arith.addf %45, %47 : vector<64x96xf32>
    %49 = vector.shape_cast %30 : vector<64x32xf32> to vector<8x8x32xf32>
    %c0_32 = arith.constant 0 : index
    %c0_33 = arith.constant 0 : index
    %c0_34 = arith.constant 0 : index
    %50 = vector.load %arg13[%c0_32, %c0_33, %c0_34] : memref<8x8x32xf32, #tpu.memory_space<vmem>>, vector<8x8x32xf32>
    tpu.vector_store %arg13[%c0_32, %c0_33, %c0_34], %49 {strides = array<i32>} : memref<8x8x32xf32, #tpu.memory_space<vmem>>, vector<8x8x32xf32>,
    %51 = vector.shape_cast %48 : vector<64x96xf32> to vector<8x8x96xf32>
    %c0_35 = arith.constant 0 : index
    %c0_36 = arith.constant 0 : index
    %c0_37 = arith.constant 0 : index
    %52 = vector.load %arg14[%c0_35, %c0_36, %c0_37] : memref<8x8x96xf32, #tpu.memory_space<vmem>>, vector<8x8x96xf32>
    tpu.vector_store %arg14[%c0_35, %c0_36, %c0_37], %51 {strides = array<i32>} : memref<8x8x96xf32, #tpu.memory_space<vmem>>, vector<8x8x96xf32>,
    %c0_38 = arith.constant 0 : index
    %c0_39 = arith.constant 0 : index
    %53 = vector.load %arg7[%c0_38, %c0_39] : memref<32x64xf32, #tpu.memory_space<vmem>>, vector<32x64xf32>
    %c0_40 = arith.constant 0 : index
    %c0_41 = arith.constant 0 : index
    %54 = vector.load %arg8[%c0_40, %c0_41] : memref<32x32xf32, #tpu.memory_space<vmem>>, vector<32x32xf32>
    %cst_42 = arith.constant 0.000000e+00 : f32
    %55 = vector.broadcast %cst_42 : f32 to vector<8x32xf32>
    %c0_i32 = arith.constant 0 : i32
    %56 = arith.index_cast %c0_i32 : i32 to index
    %c0_43 = arith.constant 0 : index
    %c0_44 = arith.constant 0 : index
    %57 = vector.load %arg13[%56, %c0_43, %c0_44] : memref<8x8x32xf32, #tpu.memory_space<vmem>>, vector<1x8x32xf32>
    %58 = vector.shape_cast %57 : vector<1x8x32xf32> to vector<8x32xf32>
    %59 = arith.index_cast %c0_i32 : i32 to index
    %c0_45 = arith.constant 0 : index
    %c0_46 = arith.constant 0 : index
    %60 = vector.load %arg14[%59, %c0_45, %c0_46] : memref<8x8x96xf32, #tpu.memory_space<vmem>>, vector<1x8x96xf32>
    %61 = vector.shape_cast %60 : vector<1x8x96xf32> to vector<8x96xf32>
    %62 = arith.mulf %58, %55 : vector<8x32xf32>
    %63 = vector.extract_strided_slice %61 {offsets = [0, 0], sizes = [8, 64], strides = [1, 1]} : vector<8x96xf32> to vector<8x64xf32>
    %cst_47 = arith.constant dense<0.000000e+00> : vector<8x64xf32>
    %64 = tpu.matmul %62, %53, %cst_47 {dimension_numbers = #tpu.dot_dimension_numbers<[1], [0], [0], [1], [0, 0, 1, 1], [], []>} : vector<8x32xf32>, vector<32x64xf32>, vector<8x64xf32> -> vector<8x64xf32>
    %65 = arith.addf %63, %64 : vector<8x64xf32>
    %66 = arith.negf %65 : vector<8x64xf32>
    %67 = math.exp %66 : vector<8x64xf32>
    %cst_48 = arith.constant 1.000000e+00 : f32
    %68 = vector.broadcast %cst_48 : f32 to vector<8x64xf32>
    %69 = arith.addf %68, %67 : vector<8x64xf32>
    %70 = arith.divf %68, %69 : vector<8x64xf32>
    %71 = vector.extract_strided_slice %70 {offsets = [0, 0], sizes = [8, 32], strides = [1, 1]} : vector<8x64xf32> to vector<8x32xf32>
    %72 = vector.extract_strided_slice %70 {offsets = [0, 32], sizes = [8, 32], strides = [1, 1]} : vector<8x64xf32> to vector<8x32xf32>
    %73 = vector.extract_strided_slice %61 {offsets = [0, 64], sizes = [8, 32], strides = [1, 1]} : vector<8x96xf32> to vector<8x32xf32>
    %74 = arith.mulf %72, %62 : vector<8x32xf32>
    %cst_49 = arith.constant dense<0.000000e+00> : vector<8x32xf32>
    %75 = tpu.matmul %74, %54, %cst_49 {dimension_numbers = #tpu.dot_dimension_numbers<[1], [0], [0], [1], [0, 0, 1, 1], [], []>} : vector<8x32xf32>, vector<32x32xf32>, vector<8x32xf32> -> vector<8x32xf32>
    %76 = arith.addf %73, %75 : vector<8x32xf32>
    %77 = math.tanh %76 : vector<8x32xf32>
    %cst_50 = arith.constant 1.000000e+00 : f32
    %78 = vector.broadcast %cst_50 : f32 to vector<8x32xf32>
    %79 = arith.subf %78, %71 : vector<8x32xf32>
    %80 = arith.mulf %79, %62 : vector<8x32xf32>
    %81 = arith.mulf %71, %77 : vector<8x32xf32>
    %82 = arith.addf %80, %81 : vector<8x32xf32>
    %c1_i32 = arith.constant 1 : i32
    %83 = arith.index_cast %c1_i32 : i32 to index
    %c0_51 = arith.constant 0 : index
    %c0_52 = arith.constant 0 : index
    %84 = vector.load %arg13[%83, %c0_51, %c0_52] : memref<8x8x32xf32, #tpu.memory_space<vmem>>, vector<1x8x32xf32>
    %85 = vector.shape_cast %84 : vector<1x8x32xf32> to vector<8x32xf32>
    %86 = arith.index_cast %c1_i32 : i32 to index
    %c0_53 = arith.constant 0 : index
    %c0_54 = arith.constant 0 : index
    %87 = vector.load %arg14[%86, %c0_53, %c0_54] : memref<8x8x96xf32, #tpu.memory_space<vmem>>, vector<1x8x96xf32>
    %88 = vector.shape_cast %87 : vector<1x8x96xf32> to vector<8x96xf32>
    %89 = arith.mulf %85, %82 : vector<8x32xf32>
    %90 = vector.extract_strided_slice %88 {offsets = [0, 0], sizes = [8, 64], strides = [1, 1]} : vector<8x96xf32> to vector<8x64xf32>
    %cst_55 = arith.constant dense<0.000000e+00> : vector<8x64xf32>
    %91 = tpu.matmul %89, %53, %cst_55 {dimension_numbers = #tpu.dot_dimension_numbers<[1], [0], [0], [1], [0, 0, 1, 1], [], []>} : vector<8x32xf32>, vector<32x64xf32>, vector<8x64xf32> -> vector<8x64xf32>
    %92 = arith.addf %90, %91 : vector<8x64xf32>
    %93 = arith.negf %92 : vector<8x64xf32>
    %94 = math.exp %93 : vector<8x64xf32>
    %cst_56 = arith.constant 1.000000e+00 : f32
    %95 = vector.broadcast %cst_56 : f32 to vector<8x64xf32>
    %96 = arith.addf %95, %94 : vector<8x64xf32>
    %97 = arith.divf %95, %96 : vector<8x64xf32>
    %98 = vector.extract_strided_slice %97 {offsets = [0, 0], sizes = [8, 32], strides = [1, 1]} : vector<8x64xf32> to vector<8x32xf32>
    %99 = vector.extract_strided_slice %97 {offsets = [0, 32], sizes = [8, 32], strides = [1, 1]} : vector<8x64xf32> to vector<8x32xf32>
    %100 = vector.extract_strided_slice %88 {offsets = [0, 64], sizes = [8, 32], strides = [1, 1]} : vector<8x96xf32> to vector<8x32xf32>
    %101 = arith.mulf %99, %89 : vector<8x32xf32>
    %cst_57 = arith.constant dense<0.000000e+00> : vector<8x32xf32>
    %102 = tpu.matmul %101, %54, %cst_57 {dimension_numbers = #tpu.dot_dimension_numbers<[1], [0], [0], [1], [0, 0, 1, 1], [], []>} : vector<8x32xf32>, vector<32x32xf32>, vector<8x32xf32> -> vector<8x32xf32>
    %103 = arith.addf %100, %102 : vector<8x32xf32>
    %104 = math.tanh %103 : vector<8x32xf32>
    %cst_58 = arith.constant 1.000000e+00 : f32
    %105 = vector.broadcast %cst_58 : f32 to vector<8x32xf32>
    %106 = arith.subf %105, %98 : vector<8x32xf32>
    %107 = arith.mulf %106, %89 : vector<8x32xf32>
    %108 = arith.mulf %98, %104 : vector<8x32xf32>
    %109 = arith.addf %107, %108 : vector<8x32xf32>
    %c2_i32 = arith.constant 2 : i32
    %110 = arith.index_cast %c2_i32 : i32 to index
    %c0_59 = arith.constant 0 : index
    %c0_60 = arith.constant 0 : index
    %111 = vector.load %arg13[%110, %c0_59, %c0_60] : memref<8x8x32xf32, #tpu.memory_space<vmem>>, vector<1x8x32xf32>
    %112 = vector.shape_cast %111 : vector<1x8x32xf32> to vector<8x32xf32>
    %113 = arith.index_cast %c2_i32 : i32 to index
    %c0_61 = arith.constant 0 : index
    %c0_62 = arith.constant 0 : index
    %114 = vector.load %arg14[%113, %c0_61, %c0_62] : memref<8x8x96xf32, #tpu.memory_space<vmem>>, vector<1x8x96xf32>
    %115 = vector.shape_cast %114 : vector<1x8x96xf32> to vector<8x96xf32>
    %116 = arith.mulf %112, %109 : vector<8x32xf32>
    %117 = vector.extract_strided_slice %115 {offsets = [0, 0], sizes = [8, 64], strides = [1, 1]} : vector<8x96xf32> to vector<8x64xf32>
    %cst_63 = arith.constant dense<0.000000e+00> : vector<8x64xf32>
    %118 = tpu.matmul %116, %53, %cst_63 {dimension_numbers = #tpu.dot_dimension_numbers<[1], [0], [0], [1], [0, 0, 1, 1], [], []>} : vector<8x32xf32>, vector<32x64xf32>, vector<8x64xf32> -> vector<8x64xf32>
    %119 = arith.addf %117, %118 : vector<8x64xf32>
    %120 = arith.negf %119 : vector<8x64xf32>
    %121 = math.exp %120 : vector<8x64xf32>
    %cst_64 = arith.constant 1.000000e+00 : f32
    %122 = vector.broadcast %cst_64 : f32 to vector<8x64xf32>
    %123 = arith.addf %122, %121 : vector<8x64xf32>
    %124 = arith.divf %122, %123 : vector<8x64xf32>
    %125 = vector.extract_strided_slice %124 {offsets = [0, 0], sizes = [8, 32], strides = [1, 1]} : vector<8x64xf32> to vector<8x32xf32>
    %126 = vector.extract_strided_slice %124 {offsets = [0, 32], sizes = [8, 32], strides = [1, 1]} : vector<8x64xf32> to vector<8x32xf32>
    %127 = vector.extract_strided_slice %115 {offsets = [0, 64], sizes = [8, 32], strides = [1, 1]} : vector<8x96xf32> to vector<8x32xf32>
    %128 = arith.mulf %126, %116 : vector<8x32xf32>
    %cst_65 = arith.constant dense<0.000000e+00> : vector<8x32xf32>
    %129 = tpu.matmul %128, %54, %cst_65 {dimension_numbers = #tpu.dot_dimension_numbers<[1], [0], [0], [1], [0, 0, 1, 1], [], []>} : vector<8x32xf32>, vector<32x32xf32>, vector<8x32xf32> -> vector<8x32xf32>
    %130 = arith.addf %127, %129 : vector<8x32xf32>
    %131 = math.tanh %130 : vector<8x32xf32>
    %cst_66 = arith.constant 1.000000e+00 : f32
    %132 = vector.broadcast %cst_66 : f32 to vector<8x32xf32>
    %133 = arith.subf %132, %125 : vector<8x32xf32>
    %134 = arith.mulf %133, %116 : vector<8x32xf32>
    %135 = arith.mulf %125, %131 : vector<8x32xf32>
    %136 = arith.addf %134, %135 : vector<8x32xf32>
    %c3_i32 = arith.constant 3 : i32
    %137 = arith.index_cast %c3_i32 : i32 to index
    %c0_67 = arith.constant 0 : index
    %c0_68 = arith.constant 0 : index
    %138 = vector.load %arg13[%137, %c0_67, %c0_68] : memref<8x8x32xf32, #tpu.memory_space<vmem>>, vector<1x8x32xf32>
    %139 = vector.shape_cast %138 : vector<1x8x32xf32> to vector<8x32xf32>
    %140 = arith.index_cast %c3_i32 : i32 to index
    %c0_69 = arith.constant 0 : index
    %c0_70 = arith.constant 0 : index
    %141 = vector.load %arg14[%140, %c0_69, %c0_70] : memref<8x8x96xf32, #tpu.memory_space<vmem>>, vector<1x8x96xf32>
    %142 = vector.shape_cast %141 : vector<1x8x96xf32> to vector<8x96xf32>
    %143 = arith.mulf %139, %136 : vector<8x32xf32>
    %144 = vector.extract_strided_slice %142 {offsets = [0, 0], sizes = [8, 64], strides = [1, 1]} : vector<8x96xf32> to vector<8x64xf32>
    %cst_71 = arith.constant dense<0.000000e+00> : vector<8x64xf32>
    %145 = tpu.matmul %143, %53, %cst_71 {dimension_numbers = #tpu.dot_dimension_numbers<[1], [0], [0], [1], [0, 0, 1, 1], [], []>} : vector<8x32xf32>, vector<32x64xf32>, vector<8x64xf32> -> vector<8x64xf32>
    %146 = arith.addf %144, %145 : vector<8x64xf32>
    %147 = arith.negf %146 : vector<8x64xf32>
    %148 = math.exp %147 : vector<8x64xf32>
    %cst_72 = arith.constant 1.000000e+00 : f32
    %149 = vector.broadcast %cst_72 : f32 to vector<8x64xf32>
    %150 = arith.addf %149, %148 : vector<8x64xf32>
    %151 = arith.divf %149, %150 : vector<8x64xf32>
    %152 = vector.extract_strided_slice %151 {offsets = [0, 0], sizes = [8, 32], strides = [1, 1]} : vector<8x64xf32> to vector<8x32xf32>
    %153 = vector.extract_strided_slice %151 {offsets = [0, 32], sizes = [8, 32], strides = [1, 1]} : vector<8x64xf32> to vector<8x32xf32>
    %154 = vector.extract_strided_slice %142 {offsets = [0, 64], sizes = [8, 32], strides = [1, 1]} : vector<8x96xf32> to vector<8x32xf32>
    %155 = arith.mulf %153, %143 : vector<8x32xf32>
    %cst_73 = arith.constant dense<0.000000e+00> : vector<8x32xf32>
    %156 = tpu.matmul %155, %54, %cst_73 {dimension_numbers = #tpu.dot_dimension_numbers<[1], [0], [0], [1], [0, 0, 1, 1], [], []>} : vector<8x32xf32>, vector<32x32xf32>, vector<8x32xf32> -> vector<8x32xf32>
    %157 = arith.addf %154, %156 : vector<8x32xf32>
    %158 = math.tanh %157 : vector<8x32xf32>
    %cst_74 = arith.constant 1.000000e+00 : f32
    %159 = vector.broadcast %cst_74 : f32 to vector<8x32xf32>
    %160 = arith.subf %159, %152 : vector<8x32xf32>
    %161 = arith.mulf %160, %143 : vector<8x32xf32>
    %162 = arith.mulf %152, %158 : vector<8x32xf32>
    %163 = arith.addf %161, %162 : vector<8x32xf32>
    %c4_i32 = arith.constant 4 : i32
    %164 = arith.index_cast %c4_i32 : i32 to index
    %c0_75 = arith.constant 0 : index
    %c0_76 = arith.constant 0 : index
    %165 = vector.load %arg13[%164, %c0_75, %c0_76] : memref<8x8x32xf32, #tpu.memory_space<vmem>>, vector<1x8x32xf32>
    %166 = vector.shape_cast %165 : vector<1x8x32xf32> to vector<8x32xf32>
    %167 = arith.index_cast %c4_i32 : i32 to index
    %c0_77 = arith.constant 0 : index
    %c0_78 = arith.constant 0 : index
    %168 = vector.load %arg14[%167, %c0_77, %c0_78] : memref<8x8x96xf32, #tpu.memory_space<vmem>>, vector<1x8x96xf32>
    %169 = vector.shape_cast %168 : vector<1x8x96xf32> to vector<8x96xf32>
    %170 = arith.mulf %166, %163 : vector<8x32xf32>
    %171 = vector.extract_strided_slice %169 {offsets = [0, 0], sizes = [8, 64], strides = [1, 1]} : vector<8x96xf32> to vector<8x64xf32>
    %cst_79 = arith.constant dense<0.000000e+00> : vector<8x64xf32>
    %172 = tpu.matmul %170, %53, %cst_79 {dimension_numbers = #tpu.dot_dimension_numbers<[1], [0], [0], [1], [0, 0, 1, 1], [], []>} : vector<8x32xf32>, vector<32x64xf32>, vector<8x64xf32> -> vector<8x64xf32>
    %173 = arith.addf %171, %172 : vector<8x64xf32>
    %174 = arith.negf %173 : vector<8x64xf32>
    %175 = math.exp %174 : vector<8x64xf32>
    %cst_80 = arith.constant 1.000000e+00 : f32
    %176 = vector.broadcast %cst_80 : f32 to vector<8x64xf32>
    %177 = arith.addf %176, %175 : vector<8x64xf32>
    %178 = arith.divf %176, %177 : vector<8x64xf32>
    %179 = vector.extract_strided_slice %178 {offsets = [0, 0], sizes = [8, 32], strides = [1, 1]} : vector<8x64xf32> to vector<8x32xf32>
    %180 = vector.extract_strided_slice %178 {offsets = [0, 32], sizes = [8, 32], strides = [1, 1]} : vector<8x64xf32> to vector<8x32xf32>
    %181 = vector.extract_strided_slice %169 {offsets = [0, 64], sizes = [8, 32], strides = [1, 1]} : vector<8x96xf32> to vector<8x32xf32>
    %182 = arith.mulf %180, %170 : vector<8x32xf32>
    %cst_81 = arith.constant dense<0.000000e+00> : vector<8x32xf32>
    %183 = tpu.matmul %182, %54, %cst_81 {dimension_numbers = #tpu.dot_dimension_numbers<[1], [0], [0], [1], [0, 0, 1, 1], [], []>} : vector<8x32xf32>, vector<32x32xf32>, vector<8x32xf32> -> vector<8x32xf32>
    %184 = arith.addf %181, %183 : vector<8x32xf32>
    %185 = math.tanh %184 : vector<8x32xf32>
    %cst_82 = arith.constant 1.000000e+00 : f32
    %186 = vector.broadcast %cst_82 : f32 to vector<8x32xf32>
    %187 = arith.subf %186, %179 : vector<8x32xf32>
    %188 = arith.mulf %187, %170 : vector<8x32xf32>
    %189 = arith.mulf %179, %185 : vector<8x32xf32>
    %190 = arith.addf %188, %189 : vector<8x32xf32>
    %c5_i32 = arith.constant 5 : i32
    %191 = arith.index_cast %c5_i32 : i32 to index
    %c0_83 = arith.constant 0 : index
    %c0_84 = arith.constant 0 : index
    %192 = vector.load %arg13[%191, %c0_83, %c0_84] : memref<8x8x32xf32, #tpu.memory_space<vmem>>, vector<1x8x32xf32>
    %193 = vector.shape_cast %192 : vector<1x8x32xf32> to vector<8x32xf32>
    %194 = arith.index_cast %c5_i32 : i32 to index
    %c0_85 = arith.constant 0 : index
    %c0_86 = arith.constant 0 : index
    %195 = vector.load %arg14[%194, %c0_85, %c0_86] : memref<8x8x96xf32, #tpu.memory_space<vmem>>, vector<1x8x96xf32>
    %196 = vector.shape_cast %195 : vector<1x8x96xf32> to vector<8x96xf32>
    %197 = arith.mulf %193, %190 : vector<8x32xf32>
    %198 = vector.extract_strided_slice %196 {offsets = [0, 0], sizes = [8, 64], strides = [1, 1]} : vector<8x96xf32> to vector<8x64xf32>
    %cst_87 = arith.constant dense<0.000000e+00> : vector<8x64xf32>
    %199 = tpu.matmul %197, %53, %cst_87 {dimension_numbers = #tpu.dot_dimension_numbers<[1], [0], [0], [1], [0, 0, 1, 1], [], []>} : vector<8x32xf32>, vector<32x64xf32>, vector<8x64xf32> -> vector<8x64xf32>
    %200 = arith.addf %198, %199 : vector<8x64xf32>
    %201 = arith.negf %200 : vector<8x64xf32>
    %202 = math.exp %201 : vector<8x64xf32>
    %cst_88 = arith.constant 1.000000e+00 : f32
    %203 = vector.broadcast %cst_88 : f32 to vector<8x64xf32>
    %204 = arith.addf %203, %202 : vector<8x64xf32>
    %205 = arith.divf %203, %204 : vector<8x64xf32>
    %206 = vector.extract_strided_slice %205 {offsets = [0, 0], sizes = [8, 32], strides = [1, 1]} : vector<8x64xf32> to vector<8x32xf32>
    %207 = vector.extract_strided_slice %205 {offsets = [0, 32], sizes = [8, 32], strides = [1, 1]} : vector<8x64xf32> to vector<8x32xf32>
    %208 = vector.extract_strided_slice %196 {offsets = [0, 64], sizes = [8, 32], strides = [1, 1]} : vector<8x96xf32> to vector<8x32xf32>
    %209 = arith.mulf %207, %197 : vector<8x32xf32>
    %cst_89 = arith.constant dense<0.000000e+00> : vector<8x32xf32>
    %210 = tpu.matmul %209, %54, %cst_89 {dimension_numbers = #tpu.dot_dimension_numbers<[1], [0], [0], [1], [0, 0, 1, 1], [], []>} : vector<8x32xf32>, vector<32x32xf32>, vector<8x32xf32> -> vector<8x32xf32>
    %211 = arith.addf %208, %210 : vector<8x32xf32>
    %212 = math.tanh %211 : vector<8x32xf32>
    %cst_90 = arith.constant 1.000000e+00 : f32
    %213 = vector.broadcast %cst_90 : f32 to vector<8x32xf32>
    %214 = arith.subf %213, %206 : vector<8x32xf32>
    %215 = arith.mulf %214, %197 : vector<8x32xf32>
    %216 = arith.mulf %206, %212 : vector<8x32xf32>
    %217 = arith.addf %215, %216 : vector<8x32xf32>
    %c6_i32 = arith.constant 6 : i32
    %218 = arith.index_cast %c6_i32 : i32 to index
    %c0_91 = arith.constant 0 : index
    %c0_92 = arith.constant 0 : index
    %219 = vector.load %arg13[%218, %c0_91, %c0_92] : memref<8x8x32xf32, #tpu.memory_space<vmem>>, vector<1x8x32xf32>
    %220 = vector.shape_cast %219 : vector<1x8x32xf32> to vector<8x32xf32>
    %221 = arith.index_cast %c6_i32 : i32 to index
    %c0_93 = arith.constant 0 : index
    %c0_94 = arith.constant 0 : index
    %222 = vector.load %arg14[%221, %c0_93, %c0_94] : memref<8x8x96xf32, #tpu.memory_space<vmem>>, vector<1x8x96xf32>
    %223 = vector.shape_cast %222 : vector<1x8x96xf32> to vector<8x96xf32>
    %224 = arith.mulf %220, %217 : vector<8x32xf32>
    %225 = vector.extract_strided_slice %223 {offsets = [0, 0], sizes = [8, 64], strides = [1, 1]} : vector<8x96xf32> to vector<8x64xf32>
    %cst_95 = arith.constant dense<0.000000e+00> : vector<8x64xf32>
    %226 = tpu.matmul %224, %53, %cst_95 {dimension_numbers = #tpu.dot_dimension_numbers<[1], [0], [0], [1], [0, 0, 1, 1], [], []>} : vector<8x32xf32>, vector<32x64xf32>, vector<8x64xf32> -> vector<8x64xf32>
    %227 = arith.addf %225, %226 : vector<8x64xf32>
    %228 = arith.negf %227 : vector<8x64xf32>
    %229 = math.exp %228 : vector<8x64xf32>
    %cst_96 = arith.constant 1.000000e+00 : f32
    %230 = vector.broadcast %cst_96 : f32 to vector<8x64xf32>
    %231 = arith.addf %230, %229 : vector<8x64xf32>
    %232 = arith.divf %230, %231 : vector<8x64xf32>
    %233 = vector.extract_strided_slice %232 {offsets = [0, 0], sizes = [8, 32], strides = [1, 1]} : vector<8x64xf32> to vector<8x32xf32>
    %234 = vector.extract_strided_slice %232 {offsets = [0, 32], sizes = [8, 32], strides = [1, 1]} : vector<8x64xf32> to vector<8x32xf32>
    %235 = vector.extract_strided_slice %223 {offsets = [0, 64], sizes = [8, 32], strides = [1, 1]} : vector<8x96xf32> to vector<8x32xf32>
    %236 = arith.mulf %234, %224 : vector<8x32xf32>
    %cst_97 = arith.constant dense<0.000000e+00> : vector<8x32xf32>
    %237 = tpu.matmul %236, %54, %cst_97 {dimension_numbers = #tpu.dot_dimension_numbers<[1], [0], [0], [1], [0, 0, 1, 1], [], []>} : vector<8x32xf32>, vector<32x32xf32>, vector<8x32xf32> -> vector<8x32xf32>
    %238 = arith.addf %235, %237 : vector<8x32xf32>
    %239 = math.tanh %238 : vector<8x32xf32>
    %cst_98 = arith.constant 1.000000e+00 : f32
    %240 = vector.broadcast %cst_98 : f32 to vector<8x32xf32>
    %241 = arith.subf %240, %233 : vector<8x32xf32>
    %242 = arith.mulf %241, %224 : vector<8x32xf32>
    %243 = arith.mulf %233, %239 : vector<8x32xf32>
    %244 = arith.addf %242, %243 : vector<8x32xf32>
    %c7_i32 = arith.constant 7 : i32
    %245 = arith.index_cast %c7_i32 : i32 to index
    %c0_99 = arith.constant 0 : index
    %c0_100 = arith.constant 0 : index
    %246 = vector.load %arg13[%245, %c0_99, %c0_100] : memref<8x8x32xf32, #tpu.memory_space<vmem>>, vector<1x8x32xf32>
    %247 = vector.shape_cast %246 : vector<1x8x32xf32> to vector<8x32xf32>
    %248 = arith.index_cast %c7_i32 : i32 to index
    %c0_101 = arith.constant 0 : index
    %c0_102 = arith.constant 0 : index
    %249 = vector.load %arg14[%248, %c0_101, %c0_102] : memref<8x8x96xf32, #tpu.memory_space<vmem>>, vector<1x8x96xf32>
    %250 = vector.shape_cast %249 : vector<1x8x96xf32> to vector<8x96xf32>
    %251 = arith.mulf %247, %244 : vector<8x32xf32>
    %252 = vector.extract_strided_slice %250 {offsets = [0, 0], sizes = [8, 64], strides = [1, 1]} : vector<8x96xf32> to vector<8x64xf32>
    %cst_103 = arith.constant dense<0.000000e+00> : vector<8x64xf32>
    %253 = tpu.matmul %251, %53, %cst_103 {dimension_numbers = #tpu.dot_dimension_numbers<[1], [0], [0], [1], [0, 0, 1, 1], [], []>} : vector<8x32xf32>, vector<32x64xf32>, vector<8x64xf32> -> vector<8x64xf32>
    %254 = arith.addf %252, %253 : vector<8x64xf32>
    %255 = arith.negf %254 : vector<8x64xf32>
    %256 = math.exp %255 : vector<8x64xf32>
    %cst_104 = arith.constant 1.000000e+00 : f32
    %257 = vector.broadcast %cst_104 : f32 to vector<8x64xf32>
    %258 = arith.addf %257, %256 : vector<8x64xf32>
    %259 = arith.divf %257, %258 : vector<8x64xf32>
    %260 = vector.extract_strided_slice %259 {offsets = [0, 0], sizes = [8, 32], strides = [1, 1]} : vector<8x64xf32> to vector<8x32xf32>
    %261 = vector.extract_strided_slice %259 {offsets = [0, 32], sizes = [8, 32], strides = [1, 1]} : vector<8x64xf32> to vector<8x32xf32>
    %262 = vector.extract_strided_slice %250 {offsets = [0, 64], sizes = [8, 32], strides = [1, 1]} : vector<8x96xf32> to vector<8x32xf32>
    %263 = arith.mulf %261, %251 : vector<8x32xf32>
    %cst_105 = arith.constant dense<0.000000e+00> : vector<8x32xf32>
    %264 = tpu.matmul %263, %54, %cst_105 {dimension_numbers = #tpu.dot_dimension_numbers<[1], [0], [0], [1], [0, 0, 1, 1], [], []>} : vector<8x32xf32>, vector<32x32xf32>, vector<8x32xf32> -> vector<8x32xf32>
    %265 = arith.addf %262, %264 : vector<8x32xf32>
    %266 = math.tanh %265 : vector<8x32xf32>
    %cst_106 = arith.constant 1.000000e+00 : f32
    %267 = vector.broadcast %cst_106 : f32 to vector<8x32xf32>
    %268 = arith.subf %267, %260 : vector<8x32xf32>
    %269 = arith.mulf %268, %251 : vector<8x32xf32>
    %270 = arith.mulf %260, %266 : vector<8x32xf32>
    %271 = arith.addf %269, %270 : vector<8x32xf32>
    %c8_i32 = arith.constant 8 : i32
    %c0_107 = arith.constant 0 : index
    %c0_108 = arith.constant 0 : index
    %272 = vector.load %arg9[%c0_107, %c0_108] : memref<4x32xf32, #tpu.memory_space<vmem>>, vector<1x32xf32>
    %c1_109 = arith.constant 1 : index
    %c0_110 = arith.constant 0 : index
    %273 = vector.load %arg9[%c1_109, %c0_110] : memref<4x32xf32, #tpu.memory_space<vmem>>, vector<1x32xf32>
    %c2_111 = arith.constant 2 : index
    %c0_112 = arith.constant 0 : index
    %274 = vector.load %arg9[%c2_111, %c0_112] : memref<4x32xf32, #tpu.memory_space<vmem>>, vector<1x32xf32>
    %c3_113 = arith.constant 3 : index
    %c0_114 = arith.constant 0 : index
    %275 = vector.load %arg9[%c3_113, %c0_114] : memref<4x32xf32, #tpu.memory_space<vmem>>, vector<1x32xf32>
    %276 = vector.broadcast %274 : vector<1x32xf32> to vector<8x32xf32>
    %277 = arith.subf %271, %276 : vector<8x32xf32>
    %cst_115 = arith.constant 9.99999974E-6 : f32
    %278 = vector.broadcast %cst_115 : f32 to vector<1x32xf32>
    %279 = arith.addf %275, %278 : vector<1x32xf32>
    %280 = math.rsqrt %279 : vector<1x32xf32>
    %281 = vector.broadcast %280 : vector<1x32xf32> to vector<8x32xf32>
    %282 = arith.mulf %277, %281 : vector<8x32xf32>
    %283 = vector.broadcast %272 : vector<1x32xf32> to vector<8x32xf32>
    %284 = arith.mulf %282, %283 : vector<8x32xf32>
    %285 = vector.broadcast %273 : vector<1x32xf32> to vector<8x32xf32>
    %286 = arith.addf %284, %285 : vector<8x32xf32>
    %c0_116 = arith.constant 0 : index
    %c0_117 = arith.constant 0 : index
    %287 = vector.load %arg10[%c0_116, %c0_117] : memref<32x1xf32, #tpu.memory_space<vmem>>, vector<32x1xf32>
    %cst_118 = arith.constant dense<0.000000e+00> : vector<8x1xf32>
    %288 = tpu.matmul %286, %287, %cst_118 {dimension_numbers = #tpu.dot_dimension_numbers<[1], [0], [0], [1], [0, 0, 1, 1], [], []>} : vector<8x32xf32>, vector<32x1xf32>, vector<8x1xf32> -> vector<8x1xf32>
    %c0_119 = arith.constant 0 : index
    %c0_120 = arith.constant 0 : index
    %289 = vector.load %arg11[%c0_119, %c0_120] : memref<1x1xf32, #tpu.memory_space<vmem>>, vector<1x1xf32>
    %290 = vector.broadcast %289 : vector<1x1xf32> to vector<8x1xf32>
    %291 = arith.addf %288, %290 : vector<8x1xf32>
    %c0_121 = arith.constant 0 : index
    %c0_122 = arith.constant 0 : index
    %292 = vector.load %arg12[%c0_121, %c0_122] : memref<8x1xf32, #tpu.memory_space<vmem>>, vector<8x1xf32>
    tpu.vector_store %arg12[%c0_121, %c0_122], %291 {strides = array<i32>} : memref<8x1xf32, #tpu.memory_space<vmem>>, vector<8x1xf32>,
    return
  }
}

</mosaic_0001>

<bundles_post_ra>
// kernel: tpu_custom_call.1
= control target key start
LH: loop header
LB: loop body
LE: loop exit
PB: predicated region body
PF: predicated region fallthrough
CT: control target
= control target key end

     0   :  { %vm145_vm0 = vcmask 130048   ;;  %vm453_vm1 = vcmask 261120   ;;  %vm462_vm2 = vcmask 785408   ;;  %s1441_s25 = smov 64   ;;  %s1975_s2 = inlined_call_operand.vmem [shape: f32[16,32], index: 2, kind: input, shape index: {}]   ;;  %s1976_s0 = inlined_call_operand.vmem [shape: f32[5,64,16], index: 0, kind: input, shape index: {}]   ;;  %s1977_s1 = inlined_call_operand.vmem [shape: f32[2,16], index: 1, kind: input, shape index: {}]   ;;  %s1978_s3 = inlined_call_operand.vmem [shape: f32[1,32], index: 3, kind: input, shape index: {}]   ;;  %s1979_s4 = inlined_call_operand.vmem [shape: f32[16,96], index: 4, kind: input, shape index: {}]   ;;  %s1980_s5 = inlined_call_operand.vmem [shape: f32[16,96], index: 5, kind: input, shape index: {}]   ;;  %s1981_s7 = inlined_call_operand.vmem [shape: f32[32,64], index: 7, kind: input, shape index: {}]   ;;  %s1982_s6 = inlined_call_operand.vmem [shape: f32[1,96], index: 6, kind: input, shape index: {}]   ;;  %s1983_s8 = inlined_call_operand.vmem [shape: f32[32,32], index: 8, kind: input, shape index: {}]   ;;  %s1984_s9 = inlined_call_operand.vmem [shape: f32[4,32], index: 9, kind: input, shape index: {}]   ;;  %s1985_s10 = inlined_call_operand.vmem [shape: f32[32,1], index: 10, kind: input, shape index: {}]   ;;  %s1986_s11 = inlined_call_operand.<no memory space> [shape: f32[1,1], index: 11, kind: input, shape index: {}]   ;;  %s1987_s12 = inlined_call_operand.vmem [shape: f32[8,1], index: 12, kind: output, shape index: {}]  }
   0x1   :  { %v140_v0 = vld [vmem:[%s1975_s2 + $0x8] sm:$0xff]  ;;  %v139_v1 = vld [vmem:[%s1975_s2] sm:$0xff]  ;;  %v1557_v27 = vld [vmem:[%s1981_s7 + $0x18] sm:$0xff] }
   0x2   :  { %184 = vmatpush.msra.mxu0 %v140_v0  ;;  %v1281_v2 = vld [vmem:[%s1976_s0 + $0xc0] sm:$0xff]  ;;  %v308_v20 = vld [vmem:[%s1979_s4 + $0x8] sm:$0xff]  ;;  %497 = vmatpush.msra.mxu3 %v1557_v27  ;;  %v1563_v28 = vld [vmem:[%s1981_s7 + $0x10] sm:$0xff] }
   0x3   :  { %v1520_v3 = vld [vmem:[%s1977_s1] ss:$0 sm:$0xff]  ;;  %v1526_v5 = vld [vmem:[%s1977_s1 + $0x1] ss:$0 sm:$0xff]  ;;  %414 = vmatpush.msra.mxu2 %v308_v20  ;;  %v310_v25 = vld [vmem:[%s1980_s5 + $0x8] sm:$0xff] }
   0x4   :  { %185 = vmatpush.msra.mxu0 %v139_v1  ;;  %v90_v4 = vmul.f32 %v1520_v3, %v1281_v2  ;;  %v1265_v12 = vld [vmem:[%s1976_s0 + $0x40] sm:$0xff]  ;;  %349 = vmatpush.msra.mxu1 %v310_v25  ;;  %v1568_v29 = vld [vmem:[%s1981_s7 + $0x8] sm:$0xff]  ;;  %v1621_v48 = vld [vmem:[%s1983_s8 + $0x18] sm:$0xff] }
   0x5   :  { %1297 = vmatmul.msk.f32.vlgmr.msra.gmra.mxu0 %vm145_vm0, %v1281_v2  ;;  %v1289_v13 = vld [vmem:[%s1976_s0 + $0x100] sm:$0xff]  ;;  %498 = vmatpush.msra.mxu3 %v1563_v28  ;;  %v1626_v49 = vld [vmem:[%s1983_s8 + $0x10] sm:$0xff]  ;;  %v1633_v51 = vld [vmem:[%s1983_s8 + $0x8] sm:$0xff] }
   0x6   :  { %v99_v6 = vadd.f32 %v1526_v5, %v90_v4  ;;  %v1273_v16 = vld [vmem:[%s1976_s0 + $0x80] sm:$0xff]  ;;  %861 = vmatpush.msrb.mxu0 %v1557_v27 }
   0x7   :  { %v251_v17 = vsub.f32 1.0, %v1273_v16  ;;  %v43_v19 = vld [vmem:[%s1976_s0] sm:$0xff]  ;;  %499 = vmatpush.msra.mxu3 %v1568_v29 }
   0x8   :  { %v107_v7 = vmax.f32 %v99_v6, 0.0  ;;  %v243_v21 = vmul.f32 %v1273_v16, %v43_v19  ;;  %v307_v23 = vld [vmem:[%s1979_s4] sm:$0xff]  ;;  %862 = vmatpush.msrb.mxu0 %v1563_v28  ;;  %v1282_v6 = vld [vmem:[%s1976_s0 + $0xc8] sm:$0xff] }
   0x9   :  { %415 = vmatpush.msra.mxu2 %v307_v23  ;;  %v309_v26 = vld [vmem:[%s1980_s5] sm:$0xff] }
   0xa   :  { %v115_v8 = vsub.f32 0.0, %v107_v7  ;;  %350 = vmatpush.msra.mxu1 %v309_v26  ;;  %v1577_v30 = vld [vmem:[%s1981_s7] sm:$0xff]  ;;  %863 = vmatpush.msrb.mxu0 %v1568_v29 }
   0xb   :  { %952 = vmatpush.msrb.mxu2 %v1557_v27  ;;  %1305 = vmatmul.msk.f32.vlgmr.msra.gmra.mxu1 %vm145_vm0, %v1273_v16  ;;  %v1594_v31 = vld [vmem:[%s1978_s3] ss:$0 sm:$0xff]  ;;  %s1439_s3 = smov 32  }
   0xc   :  { %v123_v9 = vmul.f32 1.442695, %v115_v8  ;;  %500 = vmatpush.msra.mxu3 %v1577_v30  ;;  %864 = vmatpush.msrb.mxu0 %v1577_v30  ;;  %v1611_v40 = vld [vmem:[%s1982_s6] ss:$0 sm:$0xff]  ;;  %v91_v8 = vmul.f32 %v1520_v3, %v1282_v6 }
   0xd   :  { %953 = vmatpush.msrb.mxu2 %v1563_v28  ;;  %910 = vmatpush.msrb.mxu1 %v1621_v48  ;;  %v1640_v52 = vld [vmem:[%s1983_s8] sm:$0xff]  ;;  %s1440_s8 = smov 96  }
   0xe   :  { %1357 = vpow2.f32 %v123_v9  ;;  %1043 = vmatpush.msra.mxu0 %v1557_v27  ;;  %546 = vmatpush.msrb.mxu3 %v1621_v48  ;;  %v100_v9 = vadd.f32 %v1526_v5, %v91_v8 }
   0xf   :  { %954 = vmatpush.msrb.mxu2 %v1568_v29  ;;  %911 = vmatpush.msrb.mxu1 %v1626_v49 }
  0x10   :  { %1044 = vmatpush.msra.mxu0 %v1563_v28  ;;  %547 = vmatpush.msrb.mxu3 %v1626_v49 }
  0x11   :  { %955 = vmatpush.msrb.mxu2 %v1577_v30  ;;  %912 = vmatpush.msrb.mxu1 %v1633_v51 }
  0x12   :  { %1045 = vmatpush.msra.mxu0 %v1568_v29  ;;  %548 = vmatpush.msrb.mxu3 %v1633_v51 }
  0x13   :  { %913 = vmatpush.msrb.mxu1 %v1640_v52  ;;  %1298 = vmatmul.msk.f32.gmra.mxu0 %vm145_vm0, %v1282_v6 }
  0x14   :  { %v1358_v10 = vpop.eup %1357  ;;  %1046 = vmatpush.msra.mxu0 %v1577_v30  ;;  %549 = vmatpush.msrb.mxu3 %v1640_v52 }
  0x15   :  { %v267_v11 = vsub.f32 1.0, %v1358_v10  ;;  %v259_v14 = vmul.f32 %v1358_v10, %v1265_v12  ;;  %1092 = vmatpush.msra.mxu1 %v1621_v48  ;;  %v108_v10 = vmax.f32 %v100_v9, 0.0 }
  0x17   :  { %v275_v15 = vmul.f32 %v1289_v13, %v267_v11  ;;  %1093 = vmatpush.msra.mxu1 %v1626_v49  ;;  %v116_v11 = vsub.f32 0.0, %v108_v10 }
  0x19   :  { %v283_v18 = vadd.f32 %v275_v15, %v259_v14  ;;  %1094 = vmatpush.msra.mxu1 %v1633_v51  ;;  %v125_v12 = vmul.f32 1.442695, %v116_v11  ;;  %v1266_v14 = vld [vmem:[%s1976_s0 + $0x48] sm:$0xff] }
  0x1a   :  { %v1274_v15 = vld [vmem:[%s1976_s0 + $0x88] sm:$0xff] }
  0x1b   :  { %v291_v22 = vmul.f32 %v283_v18, %v251_v17  ;;  %1095 = vmatpush.msra.mxu1 %v1640_v52  ;;  %v44_v17 = vld [vmem:[%s1976_s0 + $0x8] sm:$0xff] }
  0x1c   :  { %v1290_v18 = vld [vmem:[%s1976_s0 + $0x108] sm:$0xff]  ;;  %1306 = vmatmul.msk.f32.gmra.mxu1 %vm145_vm0, %v1274_v15 }
  0x1d   :  { %v299_v24 = vadd.f32 %v291_v22, %v243_v21  ;;  %v252_v21 = vsub.f32 1.0, %v1274_v15 }
  0x1f   :  { %1313 = vmatmul.msk.f32.vlgmr.msra.gmra.mxu2 %vm145_vm0, %v299_v24  ;;  %v244_v24 = vmul.f32 %v1274_v15, %v44_v17 }
  0x20   :  { %1134 = vmatpush.msra.mxu2 %v1557_v27 }
  0x22   :  { %1135 = vmatpush.msra.mxu2 %v1563_v28 }
  0x24   :  { %1136 = vmatpush.msra.mxu2 %v1568_v29 }
  0x26   :  { %1137 = vmatpush.msra.mxu2 %v1577_v30 }
  0x82   :  { %v187_v32 = vpop.f32.mrf.mxu0 }
  0x83   :  { %v188_v33 = vadd.f32 %v1594_v31, %v187_v32 }
  0x85   :  { %v211_v34 = vmax.f32 %v188_v33, 0.0 }
  0x87   :  { %v219_v35 = vsub.f32 0.0, %v211_v34 }
  0x88   :  { %v352_v41 = vpop.f32.mrf.mxu1 }
  0x89   :  { %v227_v36 = vmul.f32 1.442695, %v219_v35 }
  0x8b   :  { %1359 = vpow2.f32 %v227_v36 }
  0x90   :  { %v190_v20 = vpop.f32.mrf.mxu0 }
  0x91   :  { %v1360_v37 = vpop.eup %1359  ;;  %v191_v23 = vadd.f32 %v1594_v31, %v190_v20 }
  0x92   :  { %454 = vst.msk [vmem:[#allocation2] sm:$0xff] %vm453_vm1, %v1360_v37 }
  0x93   :  { %v212_v26 = vmax.f32 %v191_v23, 0.0 }
  0x95   :  { %v220_v33 = vsub.f32 0.0, %v212_v26 }
  0x97   :  { %v229_v35 = vmul.f32 1.442695, %v220_v33 }
  0x99   :  { %v479_v38 = vld [vmem:[#allocation2] sm:$0xff] }
  0x9a   :  { %v1602_v39 = vmul.f32 0.0, %v479_v38 }
  0x9c   :  { %525 = vrot.lane.b32.xlu0 %v1602_v39, %s1439_s3  ;;  %1321 = vmatmul.msk.f32.vlgmr.msra.gmra.mxu3 %vm453_vm1, %v1602_v39 }
  0x9d   :  { %588 = vmatpush.msra.mxu3 %v1557_v27 }
  0x9f   :  { %589 = vmatpush.msra.mxu3 %v1563_v28 }
  0xa1   :  { %590 = vmatpush.msra.mxu3 %v1568_v29 }
  0xa2   :  { %v417_v42 = vpop.f32.mrf.mxu2 }
  0xa3   :  { %v418_v43 = vadd.f32 %v417_v42, %v352_v41  ;;  %591 = vmatpush.msra.mxu3 %v1577_v30 }
  0xa5   :  { %v445_v44 = vadd.f32 %v1611_v40, %v418_v43 }
  0xa7   :  { %463 = vst.msk [vmem:[#allocation3] sm:$0xff] %vm462_vm2, %v445_v44 }
  0xae   :  { %v1615_v45 = vld [vmem:[#allocation3] sm:$0xff] }
 0x10e   :  { %v526_v0 = vpop.permute.xlu0 %525 }
 0x11f   :  { %v502_v46 = vpop.f32.mrf.mxu3 }
 0x120   :  { %v505_v47 = vadd.f32 %v502_v46, %v1615_v45 }
 0x122   :  { %v1322_v50 = vmul.f32 -1.442695, %v505_v47 }
 0x124   :  { %1361 = vpow2.f32 %v1322_v50 }
 0x12a   :  { %v1362_v53 = vpop.eup %1361 }
 0x12b   :  { %v509_v54 = vadd.f32 1.0, %v1362_v53 }
 0x12d   :  { %1363 = vrcp.f32 %v509_v54  ;;  %v521_v58 = vand.u32 2147483648, %v509_v54  ;;  %v519_v60 = vand.u32 2147483647, %v509_v54  ;;  %vm515_vm4 = vweird.f32 %v509_v54 }
 0x12e   :  { %1365 = vpow2.f32 %v125_v12 }
 0x12f   :  { %v522_v62 = vor.u32 1.1754944e-38, %v521_v58  ;;  %vm520_vm6 = vcmp.eq.f32.partialorder %v519_v60, 8.507059e+37  ;;  %1367 = vpow2.f32 %v229_v35 }
 0x133   :  { %v1364_v55 = vpop.eup %1363 }
 0x134   :  { %v511_v56 = vmul.f32 %v1364_v55, %v509_v54  ;;  %vm516_vm3 = vweird.f32 %v1364_v55  ;;  %v1366_v13 = vpop.eup %1365 }
 0x135   :  { %vm517_vm5 = vmor %vm515_vm4, %vm516_vm3  ;;  %v268_v16 = vsub.f32 1.0, %v1366_v13  ;;  %v260_v19 = vmul.f32 %v1366_v13, %v1266_v14  ;;  %v1368_v36 = vpop.eup %1367  ;;  %v1283_v13 = vld [vmem:[%s1976_s0 + $0xd0] sm:$0xff] }
 0x136   :  { %v512_v57 = vsub.f32 1.0, %v511_v56  ;;  %455 = vst.msk [vmem:[#allocation2 + $0x8] sm:$0xff] %vm453_vm1, %v1368_v36  ;;  %1299 = vmatmul.msk.f32.gmra.mxu0 %vm145_vm0, %v1283_v13  ;;  %v92_v15 = vmul.f32 %v1520_v3, %v1283_v13 }
 0x137   :  { %v276_v22 = vmul.f32 %v1290_v18, %v268_v16 }
 0x138   :  { %v513_v59 = vmul.f32 %v1364_v55, %v512_v57  ;;  %v101_v16 = vadd.f32 %v1526_v5, %v92_v15 }
 0x139   :  { %v284_v25 = vadd.f32 %v276_v22, %v260_v19  ;;  %v1275_v22 = vld [vmem:[%s1976_s0 + $0x90] sm:$0xff] }
 0x13a   :  { %v514_v61 = vadd.f32 %v1364_v55, %v513_v59  ;;  %v109_v17 = vmax.f32 %v101_v16, 0.0  ;;  %1307 = vmatmul.msk.f32.gmra.mxu1 %vm145_vm0, %v1275_v22  ;;  %v253_v33 = vsub.f32 1.0, %v1275_v22  ;;  %v1284_v16 = vld [vmem:[%s1976_s0 + $0xd8] sm:$0xff] }
 0x13b   :  { %v292_v32 = vmul.f32 %v284_v25, %v252_v21  ;;  %v1267_v21 = vld [vmem:[%s1976_s0 + $0x50] sm:$0xff] }
 0x13c   :  { %v518_v63 = vsel %vm517_vm5, %v1364_v55, %v514_v61  ;;  %v117_v18 = vsub.f32 0.0, %v109_v17  ;;  %v1291_v25 = vld [vmem:[%s1976_s0 + $0x110] sm:$0xff] }
 0x13d   :  { %v523_v1 = vsel %vm520_vm6, %v522_v62, %v518_v63  ;;  %v300_v34 = vadd.f32 %v292_v32, %v244_v24  ;;  %v569_v47 = vld [vmem:[#allocation2 + $0x8] sm:$0xff]  ;;  %v45_v24 = vld [vmem:[%s1976_s0 + $0x10] sm:$0xff] }
 0x13e   :  { %v528_v2 = vmul.f32 %v526_v0, %v523_v1  ;;  %v560_v42 = vsub.f32 1.0, %v523_v1  ;;  %v127_v19 = vmul.f32 1.442695, %v117_v18  ;;  %v245_v36 = vmul.f32 %v1275_v22, %v45_v24  ;;  %1300 = vmatmul.msk.f32.gmra.mxu0 %vm145_vm0, %v1284_v16  ;;  %v1268_v24 = vld [vmem:[%s1976_s0 + $0x58] sm:$0xff] }
 0x13f   :  { %1314 = vmatmul.msk.f32.gmra.mxu2 %vm145_vm0, %v300_v34  ;;  %v93_v18 = vmul.f32 %v1520_v3, %v1284_v16 }
 0x140   :  { %530 = vrot.lane.b32.xlu0 %v528_v2, %s1440_s8  ;;  %v561_v44 = vmul.f32 %v560_v42, %v1602_v39  ;;  %v355_v39 = vpop.f32.mrf.mxu1 }
 0x1b2   :  { %v531_v4 = vpop.permute.xlu0 %530 }
 0x1b3   :  { %1323 = vmatmul.msk.f32.vlgmr.msrb.gmra.mxu3 %vm453_vm1, %v531_v4  ;;  %v193_v32 = vpop.f32.mrf.mxu0 }
 0x1b4   :  { %637 = vmatpush.msrb.mxu3 %v1621_v48  ;;  %v194_v35 = vadd.f32 %v1594_v31, %v193_v32  ;;  %v46_v32 = vld [vmem:[%s1976_s0 + $0x18] sm:$0xff] }
 0x1b6   :  { %638 = vmatpush.msrb.mxu3 %v1626_v49 }
 0x1b8   :  { %639 = vmatpush.msrb.mxu3 %v1633_v51 }
 0x1ba   :  { %640 = vmatpush.msrb.mxu3 %v1640_v52 }
 0x236   :  { %v551_v7 = vpop.f32.mrf.mxu3 }
 0x237   :  { %555 = vrot.lane.b32.xlu1 %v551_v7, %s1441_s25 }
 0x2a9   :  { %v556_v37 = vpop.permute.xlu1 %555 }
 0x2aa   :  { %v558_v38 = vadd.f32 %v556_v37, %v1615_v45  ;;  %v420_v45 = vpop.f32.mrf.mxu2 }
 0x2ab   :  { %v421_v54 = vadd.f32 %v420_v45, %v355_v39 }
 0x2ac   :  { %1369 = vtanh.f32 %v558_v38  ;;  %v213_v38 = vmax.f32 %v194_v35, 0.0  ;;  %v196_v35 = vpop.f32.mrf.mxu0 }
 0x2ad   :  { %v446_v55 = vadd.f32 %v1611_v40, %v421_v54 }
 0x2ae   :  { %v221_v42 = vsub.f32 0.0, %v213_v38  ;;  %v197_v38 = vadd.f32 %v1594_v31, %v196_v35 }
 0x2af   :  { %464 = vst.msk [vmem:[#allocation3 + $0x8] sm:$0xff] %vm462_vm2, %v446_v55 }
 0x2b2   :  { %v1370_v41 = vpop.eup %1369 }
 0x2b3   :  { %563 = vrot.lane.b32.xlu1 %v1370_v41, %s1441_s25 }
 0x2b6   :  { %v1698_v56 = vld [vmem:[#allocation3 + $0x8] sm:$0xff] }
 0x325   :  { %v564_v43 = vpop.permute.xlu1 %563 }
 0x326   :  { %v566_v46 = vmul.f32 %v564_v43, %v523_v1 }
 0x328   :  { %v567_v50 = vadd.f32 %v566_v46, %v561_v44  ;;  %v231_v44 = vmul.f32 1.442695, %v221_v42 }
 0x32a   :  { %v1686_v53 = vmul.f32 %v569_v47, %v567_v50 }
 0x32c   :  { %616 = vrot.lane.b32.xlu2 %v1686_v53, %s1439_s3  ;;  %1324 = vmatmul.msk.f32.vlgmr.msra.gmra.mxu3 %vm453_vm1, %v1686_v53 }
 0x32d   :  { %679 = vmatpush.msra.mxu3 %v1557_v27 }
 0x32f   :  { %680 = vmatpush.msra.mxu3 %v1563_v28 }
 0x331   :  { %681 = vmatpush.msra.mxu3 %v1568_v29 }
 0x333   :  { %682 = vmatpush.msra.mxu3 %v1577_v30 }
 0x386   :  { %v617_v9 = vpop.permute.xlu2 %616 }
 0x3af   :  { %v593_v57 = vpop.f32.mrf.mxu3 }
 0x3b0   :  { %v596_v58 = vadd.f32 %v593_v57, %v1698_v56 }
 0x3b2   :  { %v1325_v59 = vmul.f32 -1.442695, %v596_v58 }
 0x3b4   :  { %1371 = vpow2.f32 %v1325_v59 }
 0x3ba   :  { %v1372_v60 = vpop.eup %1371 }
 0x3bb   :  { %v600_v61 = vadd.f32 1.0, %v1372_v60 }
 0x3bd   :  { %1373 = vrcp.f32 %v600_v61  ;;  %v612_v1 = vand.u32 2147483648, %v600_v61  ;;  %v610_v4 = vand.u32 2147483647, %v600_v61  ;;  %vm606_vm8 = vweird.f32 %v600_v61 }
 0x3be   :  { %1375 = vpow2.f32 %v127_v19  ;;  %v102_v19 = vadd.f32 %v1526_v5, %v93_v18 }
 0x3bf   :  { %v613_v7 = vor.u32 1.1754944e-38, %v612_v1  ;;  %vm611_vm10 = vcmp.eq.f32.partialorder %v610_v4, 8.507059e+37  ;;  %1377 = vpow2.f32 %v231_v44 }
 0x3c3   :  { %v1374_v62 = vpop.eup %1373 }
 0x3c4   :  { %v602_v63 = vmul.f32 %v1374_v62, %v600_v61  ;;  %vm607_vm7 = vweird.f32 %v1374_v62  ;;  %v1376_v20 = vpop.eup %1375 }
 0x3c5   :  { %vm608_vm9 = vmor %vm606_vm8, %vm607_vm7  ;;  %v269_v23 = vsub.f32 1.0, %v1376_v20  ;;  %v261_v26 = vmul.f32 %v1376_v20, %v1267_v21  ;;  %v1378_v46 = vpop.eup %1377  ;;  %v110_v20 = vmax.f32 %v102_v19, 0.0  ;;  %v1285_v19 = vld [vmem:[%s1976_s0 + $0xe0] sm:$0xff] }
 0x3c6   :  { %v603_v0 = vsub.f32 1.0, %v602_v63  ;;  %456 = vst.msk [vmem:[#allocation2 + $0x10] sm:$0xff] %vm453_vm1, %v1378_v46  ;;  %1301 = vmatmul.msk.f32.gmra.mxu0 %vm145_vm0, %v1285_v19 }
 0x3c7   :  { %v277_v34 = vmul.f32 %v1291_v25, %v269_v23  ;;  %v118_v21 = vsub.f32 0.0, %v110_v20  ;;  %v1276_v25 = vld [vmem:[%s1976_s0 + $0x98] sm:$0xff] }
 0x3c8   :  { %v604_v2 = vmul.f32 %v1374_v62, %v603_v0  ;;  %1308 = vmatmul.msk.f32.gmra.mxu1 %vm145_vm0, %v1276_v25 }
 0x3c9   :  { %v285_v37 = vadd.f32 %v277_v34, %v261_v26  ;;  %v129_v22 = vmul.f32 1.442695, %v118_v21  ;;  %v94_v21 = vmul.f32 %v1520_v3, %v1285_v19 }
 0x3ca   :  { %v605_v6 = vadd.f32 %v1374_v62, %v604_v2 }
 0x3cb   :  { %v293_v41 = vmul.f32 %v285_v37, %v253_v33  ;;  %v1292_v33 = vld [vmem:[%s1976_s0 + $0x118] sm:$0xff] }
 0x3cc   :  { %v609_v8 = vsel %vm608_vm9, %v1374_v62, %v605_v6 }
 0x3cd   :  { %v614_v10 = vsel %vm611_vm10, %v613_v7, %v609_v8  ;;  %v301_v43 = vadd.f32 %v293_v41, %v245_v36  ;;  %v660_v58 = vld [vmem:[#allocation2 + $0x10] sm:$0xff]  ;;  %v254_v36 = vsub.f32 1.0, %v1276_v25  ;;  %v246_v41 = vmul.f32 %v1276_v25, %v46_v32  ;;  %v1277_v32 = vld [vmem:[%s1976_s0 + $0xa0] sm:$0xff] }
 0x3ce   :  { %v619_v11 = vmul.f32 %v617_v9, %v614_v10  ;;  %v651_v45 = vsub.f32 1.0, %v614_v10  ;;  %v255_v35 = vsub.f32 1.0, %v1277_v32 }
 0x3cf   :  { %1315 = vmatmul.msk.f32.gmra.mxu2 %vm145_vm0, %v301_v43  ;;  %v214_v43 = vmax.f32 %v197_v38, 0.0 }
 0x3d0   :  { %621 = vrot.lane.b32.xlu2 %v619_v11, %s1440_s8  ;;  %v652_v55 = vmul.f32 %v651_v45, %v1686_v53  ;;  %v358_v53 = vpop.f32.mrf.mxu1  ;;  %1309 = vmatmul.msk.f32.gmra.mxu1 %vm145_vm0, %v1277_v32 }
 0x3d1   :  { %v222_v46 = vsub.f32 0.0, %v214_v43 }
 0x42a   :  { %v622_v12 = vpop.permute.xlu2 %621 }
 0x42b   :  { %1326 = vmatmul.msk.f32.vlgmr.msrb.gmra.mxu3 %vm453_vm1, %v622_v12 }
 0x42c   :  { %728 = vmatpush.msrb.mxu3 %v1621_v48 }
 0x42e   :  { %729 = vmatpush.msrb.mxu3 %v1626_v49 }
 0x430   :  { %730 = vmatpush.msrb.mxu3 %v1633_v51 }
 0x432   :  { %731 = vmatpush.msrb.mxu3 %v1640_v52 }
 0x4ae   :  { %v642_v14 = vpop.f32.mrf.mxu3 }
 0x4af   :  { %646 = vrot.lane.b32.xlu0 %v642_v14, %s1441_s25 }
 0x521   :  { %v647_v47 = vpop.permute.xlu0 %646 }
 0x522   :  { %v649_v50 = vadd.f32 %v647_v47, %v1698_v56  ;;  %v423_v56 = vpop.f32.mrf.mxu2 }
 0x523   :  { %v424_v61 = vadd.f32 %v423_v56, %v358_v53 }
 0x524   :  { %1379 = vtanh.f32 %v649_v50  ;;  %v233_v50 = vmul.f32 1.442695, %v222_v46 }
 0x525   :  { %v447_v62 = vadd.f32 %v1611_v40, %v424_v61 }
 0x527   :  { %465 = vst.msk [vmem:[#allocation3 + $0x10] sm:$0xff] %vm462_vm2, %v447_v62 }
 0x52a   :  { %v1380_v39 = vpop.eup %1379 }
 0x52b   :  { %654 = vrot.lane.b32.xlu1 %v1380_v39, %s1441_s25 }
 0x52e   :  { %v1745_v63 = vld [vmem:[#allocation3 + $0x10] sm:$0xff] }
 0x59d   :  { %v655_v54 = vpop.permute.xlu1 %654 }
 0x59e   :  { %v657_v57 = vmul.f32 %v655_v54, %v614_v10 }
 0x5a0   :  { %v658_v59 = vadd.f32 %v657_v57, %v652_v55 }
 0x5a2   :  { %v1733_v60 = vmul.f32 %v660_v58, %v658_v59 }
 0x5a4   :  { %707 = vrot.lane.b32.xlu2 %v1733_v60, %s1439_s3  ;;  %1327 = vmatmul.msk.f32.vlgmr.msra.gmra.mxu3 %vm453_vm1, %v1733_v60 }
 0x5a5   :  { %770 = vmatpush.msra.mxu3 %v1557_v27 }
 0x5a7   :  { %771 = vmatpush.msra.mxu3 %v1563_v28 }
 0x5a9   :  { %772 = vmatpush.msra.mxu3 %v1568_v29 }
 0x5ab   :  { %773 = vmatpush.msra.mxu3 %v1577_v30 }
 0x5fe   :  { %v708_v12 = vpop.permute.xlu2 %707 }
 0x627   :  { %v684_v0 = vpop.f32.mrf.mxu3 }
 0x628   :  { %v687_v1 = vadd.f32 %v684_v0, %v1745_v63 }
 0x62a   :  { %v1328_v2 = vmul.f32 -1.442695, %v687_v1 }
 0x62c   :  { %1381 = vpow2.f32 %v1328_v2 }
 0x632   :  { %v1382_v27 = vpop.eup %1381 }
 0x633   :  { %v691_v28 = vadd.f32 1.0, %v1382_v27 }
 0x635   :  { %1383 = vrcp.f32 %v691_v28  ;;  %v703_v6 = vand.u32 2147483648, %v691_v28  ;;  %v701_v8 = vand.u32 2147483647, %v691_v28  ;;  %vm697_vm12 = vweird.f32 %v691_v28 }
 0x636   :  { %1385 = vpow2.f32 %v129_v22  ;;  %v103_v22 = vadd.f32 %v1526_v5, %v94_v21 }
 0x637   :  { %v704_v10 = vor.u32 1.1754944e-38, %v703_v6  ;;  %vm702_vm14 = vcmp.eq.f32.partialorder %v701_v8, 8.507059e+37  ;;  %1387 = vpow2.f32 %v233_v50  ;;  %v199_v50 = vpop.f32.mrf.mxu0 }
 0x63b   :  { %v1384_v29 = vpop.eup %1383 }
 0x63c   :  { %v693_v4 = vmul.f32 %v1384_v29, %v691_v28  ;;  %vm698_vm11 = vweird.f32 %v1384_v29  ;;  %v1386_v23 = vpop.eup %1385 }
 0x63d   :  { %vm699_vm13 = vmor %vm697_vm12, %vm698_vm11  ;;  %v270_v26 = vsub.f32 1.0, %v1386_v23  ;;  %v262_v34 = vmul.f32 %v1386_v23, %v1268_v24  ;;  %v1388_v39 = vpop.eup %1387  ;;  %v1269_v24 = vld [vmem:[%s1976_s0 + $0x60] sm:$0xff] }
 0x63e   :  { %v694_v30 = vsub.f32 1.0, %v693_v4  ;;  %457 = vst.msk [vmem:[#allocation2 + $0x18] sm:$0xff] %vm453_vm1, %v1388_v39  ;;  %v200_v39 = vadd.f32 %v1594_v31, %v199_v50  ;;  %v1271_v50 = vld [vmem:[%s1976_s0 + $0x70] sm:$0xff] }
 0x63f   :  { %v278_v37 = vmul.f32 %v1292_v33, %v270_v26  ;;  %v47_v26 = vld [vmem:[%s1976_s0 + $0x20] sm:$0xff] }
 0x640   :  { %v695_v7 = vmul.f32 %v1384_v29, %v694_v30  ;;  %v1293_v33 = vld [vmem:[%s1976_s0 + $0x120] sm:$0xff] }
 0x641   :  { %v286_v42 = vadd.f32 %v278_v37, %v262_v34  ;;  %v247_v37 = vmul.f32 %v1277_v32, %v47_v26 }
 0x642   :  { %v696_v9 = vadd.f32 %v1384_v29, %v695_v7 }
 0x643   :  { %v294_v44 = vmul.f32 %v286_v42, %v254_v36  ;;  %v1287_v42 = vld [vmem:[%s1976_s0 + $0xf0] sm:$0xff] }
 0x644   :  { %v700_v11 = vsel %vm699_vm13, %v1384_v29, %v696_v9  ;;  %v96_v21 = vmul.f32 %v1520_v3, %v1287_v42 }
 0x645   :  { %v705_v13 = vsel %vm702_vm14, %v704_v10, %v700_v11  ;;  %v302_v47 = vadd.f32 %v294_v44, %v246_v41  ;;  %v751_v56 = vld [vmem:[#allocation2 + $0x18] sm:$0xff] }
 0x646   :  { %v710_v14 = vmul.f32 %v708_v12, %v705_v13  ;;  %v742_v57 = vsub.f32 1.0, %v705_v13 }
 0x647   :  { %1316 = vmatmul.msk.f32.gmra.mxu2 %vm145_vm0, %v302_v47  ;;  %v1288_v47 = vld [vmem:[%s1976_s0 + $0xf8] sm:$0xff] }
 0x648   :  { %712 = vrot.lane.b32.xlu0 %v710_v14, %s1440_s8  ;;  %v743_v59 = vmul.f32 %v742_v57, %v1733_v60  ;;  %v361_v60 = vpop.f32.mrf.mxu1 }
 0x6ba   :  { %v713_v15 = vpop.permute.xlu0 %712 }
 0x6bb   :  { %1329 = vmatmul.msk.f32.vlgmr.msrb.gmra.mxu3 %vm453_vm1, %v713_v15 }
 0x6bc   :  { %819 = vmatpush.msrb.mxu3 %v1621_v48 }
 0x6be   :  { %820 = vmatpush.msrb.mxu3 %v1626_v49 }
 0x6c0   :  { %821 = vmatpush.msrb.mxu3 %v1633_v51 }
 0x6c2   :  { %822 = vmatpush.msrb.mxu3 %v1640_v52 }
 0x73e   :  { %v733_v17 = vpop.f32.mrf.mxu3 }
 0x73f   :  { %737 = vrot.lane.b32.xlu1 %v733_v17, %s1441_s25 }
 0x7b1   :  { %v738_v45 = vpop.permute.xlu1 %737 }
 0x7b2   :  { %v740_v54 = vadd.f32 %v738_v45, %v1745_v63  ;;  %v426_v63 = vpop.f32.mrf.mxu2  ;;  %v215_v45 = vmax.f32 %v200_v39, 0.0 }
 0x7b3   :  { %v427_v0 = vadd.f32 %v426_v63, %v361_v60 }
 0x7b4   :  { %1389 = vtanh.f32 %v740_v54 }
 0x7b5   :  { %v448_v1 = vadd.f32 %v1611_v40, %v427_v0 }
 0x7b7   :  { %466 = vst.msk [vmem:[#allocation3 + $0x18] sm:$0xff] %vm462_vm2, %v448_v1 }
 0x7ba   :  { %v1390_v55 = vpop.eup %1389 }
 0x7bb   :  { %745 = vrot.lane.b32.xlu2 %v1390_v55, %s1441_s25  ;;  %v223_v55 = vsub.f32 0.0, %v215_v45 }
 0x7bd   :  { %v235_v57 = vmul.f32 1.442695, %v223_v55  ;;  %v1295_v55 = vld [vmem:[%s1976_s0 + $0x130] sm:$0xff] }
 0x7be   :  { %v753_v2 = vld [vmem:[#allocation3 + $0x18] sm:$0xff] }
 0x815   :  { %v746_v58 = vpop.permute.xlu2 %745 }
 0x816   :  { %v748_v53 = vmul.f32 %v746_v58, %v705_v13 }
 0x818   :  { %v749_v61 = vadd.f32 %v748_v53, %v743_v59 }
 0x81a   :  { %v1780_v62 = vmul.f32 %v751_v56, %v749_v61 }
 0x81c   :  { %798 = vrot.lane.b32.xlu0 %v1780_v62, %s1439_s3  ;;  %1330 = vmatmul.msk.f32.vlgmr.msra.gmra.mxu3 %vm453_vm1, %v1780_v62 }
 0x81d   :  { %1001 = vmatpush.msra.mxu3 %v1621_v48 }
 0x81f   :  { %1002 = vmatpush.msra.mxu3 %v1626_v49 }
 0x821   :  { %1003 = vmatpush.msra.mxu3 %v1633_v51 }
 0x823   :  { %1004 = vmatpush.msra.mxu3 %v1640_v52 }
 0x88e   :  { %v799_v15 = vpop.permute.xlu0 %798 }
 0x89f   :  { %v775_v27 = vpop.f32.mrf.mxu3 }
 0x8a0   :  { %v778_v28 = vadd.f32 %v775_v27, %v753_v2 }
 0x8a2   :  { %v1331_v29 = vmul.f32 -1.442695, %v778_v28 }
 0x8a4   :  { %1391 = vpow2.f32 %v1331_v29 }
 0x8aa   :  { %v1392_v4 = vpop.eup %1391 }
 0x8ab   :  { %v782_v30 = vadd.f32 1.0, %v1392_v4 }
 0x8ad   :  { %1393 = vrcp.f32 %v782_v30  ;;  %v794_v9 = vand.u32 2147483648, %v782_v30  ;;  %v792_v11 = vand.u32 2147483647, %v782_v30  ;;  %vm788_vm3 = vweird.f32 %v782_v30 }
 0x8af   :  { %v795_v13 = vor.u32 1.1754944e-38, %v794_v9  ;;  %vm793_vm5 = vcmp.eq.f32.partialorder %v792_v11, 8.507059e+37 }
 0x8b3   :  { %v1394_v6 = vpop.eup %1393 }
 0x8b4   :  { %v784_v7 = vmul.f32 %v1394_v6, %v782_v30  ;;  %vm789_vm15 = vweird.f32 %v1394_v6 }
 0x8b5   :  { %vm790_vm4 = vmor %vm788_vm3, %vm789_vm15 }
 0x8b6   :  { %v785_v8 = vsub.f32 1.0, %v784_v7  ;;  %v364_v7 = vpop.f32.mrf.mxu1 }
 0x8b8   :  { %v786_v10 = vmul.f32 %v1394_v6, %v785_v8 }
 0x8ba   :  { %v787_v12 = vadd.f32 %v1394_v6, %v786_v10 }
 0x8bc   :  { %v791_v14 = vsel %vm790_vm4, %v1394_v6, %v787_v12 }
 0x8bd   :  { %v1792_v16 = vsel %vm793_vm5, %v795_v13, %v791_v14 }
 0x8be   :  { %v801_v17 = vmul.f32 %v799_v15, %v1792_v16  ;;  %v833_v60 = vsub.f32 1.0, %v1792_v16 }
 0x8c0   :  { %803 = vrot.lane.b32.xlu1 %v801_v17, %s1440_s8  ;;  %v834_v27 = vmul.f32 %v833_v60, %v1780_v62 }
 0x932   :  { %v804_v18 = vpop.permute.xlu1 %803 }
 0x933   :  { %1332 = vmatmul.msk.f32.vlgmr.msrb.gmra.mxu3 %vm453_vm1, %v804_v18 }
 0x934   :  { %1183 = vmatpush.msrb.mxu3 %v1621_v48  ;;  %v111_v48 = vmax.f32 %v103_v22, 0.0 }
 0x936   :  { %1184 = vmatpush.msrb.mxu3 %v1626_v49  ;;  %v119_v23 = vsub.f32 0.0, %v111_v48  ;;  %v105_v48 = vadd.f32 %v1526_v5, %v96_v21 }
 0x938   :  { %1185 = vmatpush.msrb.mxu3 %v1633_v51  ;;  %v131_v49 = vmul.f32 1.442695, %v119_v23  ;;  %v97_v23 = vmul.f32 %v1520_v3, %v1288_v47 }
 0x93a   :  { %1186 = vmatpush.msrb.mxu3 %v1640_v52  ;;  %1395 = vpow2.f32 %v131_v49  ;;  %v1811_v52 = vld [vmem:[%s1976_s0 + $0xe8] sm:$0xff] }
 0x93b   :  { %1302 = vmatmul.msk.f32.gmra.mxu0 %vm145_vm0, %v1811_v52  ;;  %v95_v19 = vmul.f32 %v1520_v3, %v1811_v52 }
 0x93d   :  { %v104_v22 = vadd.f32 %v1526_v5, %v95_v19 }
 0x93f   :  { %v112_v49 = vmax.f32 %v104_v22, 0.0 }
 0x940   :  { %v1396_v51 = vpop.eup %1395 }
 0x941   :  { %v271_v25 = vsub.f32 1.0, %v1396_v51  ;;  %v263_v34 = vmul.f32 %v1396_v51, %v1269_v24  ;;  %v106_v51 = vadd.f32 %v1526_v5, %v97_v23  ;;  %v120_v24 = vsub.f32 0.0, %v112_v49  ;;  %v1270_v5 = vld [vmem:[%s1976_s0 + $0x68] sm:$0xff] }
 0x943   :  { %v279_v36 = vmul.f32 %v1293_v33, %v271_v25  ;;  %1303 = vmatmul.msk.f32.gmra.mxu0 %vm145_vm0, %v1287_v42  ;;  %v114_v26 = vmax.f32 %v106_v51, 0.0  ;;  %v133_v32 = vmul.f32 1.442695, %v120_v24 }
 0x945   :  { %v287_v38 = vadd.f32 %v279_v36, %v263_v34  ;;  %v122_v33 = vsub.f32 0.0, %v114_v26 }
 0x947   :  { %v295_v41 = vmul.f32 %v287_v38, %v255_v35  ;;  %v137_v34 = vmul.f32 1.442695, %v122_v33 }
 0x949   :  { %v303_v43 = vadd.f32 %v295_v41, %v247_v37  ;;  %v1278_v41 = vld [vmem:[%s1976_s0 + $0xa8] sm:$0xff] }
 0x94a   :  { %1310 = vmatmul.msk.f32.gmra.mxu1 %vm145_vm0, %v1278_v41  ;;  %v256_v45 = vsub.f32 1.0, %v1278_v41 }
 0x94b   :  { %1317 = vmatmul.msk.f32.gmra.mxu2 %vm145_vm0, %v303_v43  ;;  %1304 = vmatmul.msk.f32.gmra.mxu0 %vm145_vm0, %v1288_v47 }
 0x9b6   :  { %v824_v20 = vpop.f32.mrf.mxu3 }
 0x9b7   :  { %828 = vrot.lane.b32.xlu2 %v824_v20, %s1441_s25 }
 0x9b8   :  { %v202_v59 = vpop.f32.mrf.mxu0 }
 0x9b9   :  { %v203_v53 = vadd.f32 %v1594_v31, %v202_v59  ;;  %v1279_v59 = vld [vmem:[%s1976_s0 + $0xb0] sm:$0xff] }
 0x9ba   :  { %1311 = vmatmul.msk.f32.gmra.mxu1 %vm145_vm0, %v1279_v59 }
 0x9bb   :  { %v216_v56 = vmax.f32 %v203_v53, 0.0 }
 0x9bd   :  { %v224_v61 = vsub.f32 0.0, %v216_v56 }
 0x9bf   :  { %v237_v63 = vmul.f32 1.442695, %v224_v61 }
 0x9c0   :  { %v205_v0 = vpop.f32.mrf.mxu0 }
 0x9c1   :  { %v206_v1 = vadd.f32 %v1594_v31, %v205_v0 }
 0x9c3   :  { %v217_v29 = vmax.f32 %v206_v1, 0.0 }
 0x9c5   :  { %v225_v6 = vsub.f32 0.0, %v217_v29 }
 0x9c7   :  { %v239_v10 = vmul.f32 1.442695, %v225_v6 }
 0x9c8   :  { %v208_v14 = vpop.f32.mrf.mxu0 }
 0x9c9   :  { %v209_v15 = vadd.f32 %v1594_v31, %v208_v14  ;;  %v113_v31 = vmax.f32 %v105_v48, 0.0  ;;  %v50_v14 = vld [vmem:[%s1976_s0 + $0x38] sm:$0xff] }
 0x9cb   :  { %v121_v25 = vsub.f32 0.0, %v113_v31 }
 0x9cd   :  { %v135_v52 = vmul.f32 1.442695, %v121_v25 }
 0x9ce   :  { %v429_v11 = vpop.f32.mrf.mxu2 }
 0x9cf   :  { %v430_v12 = vadd.f32 %v429_v11, %v364_v7  ;;  %v1280_v11 = vld [vmem:[%s1976_s0 + $0xb8] sm:$0xff] }
 0x9d0   :  { %1312 = vmatmul.msk.f32.gmra.mxu1 %vm145_vm0, %v1280_v11 }
 0x9d1   :  { %v449_v62 = vadd.f32 %v1611_v40, %v430_v12 }
 0x9d3   :  { %467 = vst.msk [vmem:[#allocation3 + $0x20] sm:$0xff] %vm462_vm2, %v449_v62  ;;  %v258_v62 = vsub.f32 1.0, %v1280_v11 }
 0x9da   :  { %v1864_v37 = vld [vmem:[#allocation3 + $0x20] sm:$0xff] }
 0xa11   :  { %v829_v44 = vpop.permute.xlu2 %828 }
 0xa12   :  { %v831_v46 = vadd.f32 %v829_v44, %v753_v2  ;;  %v48_v44 = vld [vmem:[%s1976_s0 + $0x28] sm:$0xff] }
 0xa13   :  { %v248_v56 = vmul.f32 %v1278_v41, %v48_v44 }
 0xa14   :  { %1397 = vtanh.f32 %v831_v46  ;;  %v1294_v46 = vld [vmem:[%s1976_s0 + $0x128] sm:$0xff] }
 0xa15   :  { %1399 = vpow2.f32 %v235_v57 }
 0xa16   :  { %1401 = vpow2.f32 %v237_v63  ;;  %v257_v63 = vsub.f32 1.0, %v1279_v59 }
 0xa17   :  { %1403 = vpow2.f32 %v239_v10 }
 0xa1a   :  { %v1398_v54 = vpop.eup %1397 }
 0xa1b   :  { %836 = vrot.lane.b32.xlu0 %v1398_v54, %s1441_s25  ;;  %v1400_v58 = vpop.eup %1399 }
 0xa1c   :  { %458 = vst.msk [vmem:[#allocation2 + $0x20] sm:$0xff] %vm453_vm1, %v1400_v58  ;;  %v1402_v8 = vpop.eup %1401 }
 0xa1d   :  { %459 = vst.msk [vmem:[#allocation2 + $0x28] sm:$0xff] %vm453_vm1, %v1402_v8  ;;  %v1404_v13 = vpop.eup %1403 }
 0xa1e   :  { %460 = vst.msk [vmem:[#allocation2 + $0x30] sm:$0xff] %vm453_vm1, %v1404_v13 }
 0xa23   :  { %v842_v4 = vld [vmem:[#allocation2 + $0x20] sm:$0xff] }
 0xa8d   :  { %v837_v2 = vpop.permute.xlu0 %836 }
 0xa8e   :  { %v839_v28 = vmul.f32 %v837_v2, %v1792_v16  ;;  %v218_v16 = vmax.f32 %v209_v15, 0.0  ;;  %v49_v2 = vld [vmem:[%s1976_s0 + $0x30] sm:$0xff]  ;;  %v250_v15 = vmul.f32 %v1280_v11, %v50_v14 }
 0xa90   :  { %v840_v30 = vadd.f32 %v839_v28, %v834_v27  ;;  %v226_v17 = vsub.f32 0.0, %v218_v16  ;;  %v1272_v27 = vld [vmem:[%s1976_s0 + $0x78] sm:$0xff] }
 0xa91   :  { %v1296_v28 = vld [vmem:[%s1976_s0 + $0x138] sm:$0xff] }
 0xa92   :  { %v1845_v9 = vmul.f32 %v842_v4, %v840_v30  ;;  %v241_v18 = vmul.f32 1.442695, %v226_v17  ;;  %v249_v30 = vmul.f32 %v1279_v59, %v49_v2 }
 0xa94   :  { %889 = vrot.lane.b32.xlu1 %v1845_v9, %s1439_s3  ;;  %1333 = vmatmul.msk.f32.vlgmr.msrb.gmra.mxu0 %vm453_vm1, %v1845_v9  ;;  %1405 = vpow2.f32 %v241_v18 }
 0xa95   :  { %1407 = vpow2.f32 %v133_v32  ;;  %v367_v32 = vpop.f32.mrf.mxu1 }
 0xa96   :  { %1409 = vpow2.f32 %v135_v52 }
 0xa97   :  { %1411 = vpow2.f32 %v137_v34 }
 0xa9a   :  { %v1406_v20 = vpop.eup %1405 }
 0xa9b   :  { %461 = vst.msk [vmem:[#allocation2 + $0x38] sm:$0xff] %vm453_vm1, %v1406_v20  ;;  %v1408_v35 = vpop.eup %1407 }
 0xa9c   :  { %v1410_v36 = vpop.eup %1409  ;;  %v272_v42 = vsub.f32 1.0, %v1408_v35  ;;  %v264_v47 = vmul.f32 %v1408_v35, %v1270_v5 }
 0xa9d   :  { %v273_v43 = vsub.f32 1.0, %v1410_v36  ;;  %v265_v57 = vmul.f32 %v1410_v36, %v1271_v50  ;;  %v1412_v58 = vpop.eup %1411  ;;  %v370_v35 = vpop.f32.mrf.mxu1 }
 0xa9e   :  { %v280_v54 = vmul.f32 %v1294_v46, %v272_v42  ;;  %v274_v1 = vsub.f32 1.0, %v1412_v58  ;;  %v266_v7 = vmul.f32 %v1412_v58, %v1272_v27  ;;  %v933_v58 = vld [vmem:[#allocation2 + $0x28] sm:$0xff] }
 0xa9f   :  { %v281_v53 = vmul.f32 %v1295_v55, %v273_v43 }
 0xaa0   :  { %v288_v61 = vadd.f32 %v280_v54, %v264_v47  ;;  %v282_v8 = vmul.f32 %v1296_v28, %v274_v1 }
 0xaa1   :  { %v289_v0 = vadd.f32 %v281_v53, %v265_v57 }
 0xaa2   :  { %v296_v60 = vmul.f32 %v288_v61, %v256_v45  ;;  %v290_v13 = vadd.f32 %v282_v8, %v266_v7 }
 0xaa3   :  { %v297_v6 = vmul.f32 %v289_v0, %v257_v63 }
 0xaa4   :  { %v304_v29 = vadd.f32 %v296_v60, %v248_v56  ;;  %v298_v16 = vmul.f32 %v290_v13, %v258_v62 }
 0xaa5   :  { %v305_v12 = vadd.f32 %v297_v6, %v249_v30  ;;  %v373_v5 = vpop.f32.mrf.mxu1 }
 0xaa6   :  { %1318 = vmatmul.msk.f32.gmra.mxu2 %vm145_vm0, %v304_v29  ;;  %v306_v20 = vadd.f32 %v298_v16, %v250_v15 }
 0xaae   :  { %1319 = vmatmul.msk.f32.gmra.mxu2 %vm145_vm0, %v305_v12 }
 0xab6   :  { %1320 = vmatmul.msk.f32.gmra.mxu2 %vm145_vm0, %v306_v20 }
 0xb06   :  { %v890_v51 = vpop.permute.xlu1 %889 }
 0xb11   :  { %v866_v38 = vpop.f32.mrf.mxu0 }
 0xb12   :  { %v869_v3 = vadd.f32 %v866_v38, %v1864_v37 }
 0xb14   :  { %v1334_v39 = vmul.f32 -1.442695, %v869_v3 }
 0xb16   :  { %1413 = vpow2.f32 %v1334_v39 }
 0xb1c   :  { %v1414_v4 = vpop.eup %1413 }
 0xb1d   :  { %v873_v10 = vadd.f32 1.0, %v1414_v4 }
 0xb1f   :  { %1415 = vrcp.f32 %v873_v10  ;;  %v885_v21 = vand.u32 2147483648, %v873_v10  ;;  %v883_v48 = vand.u32 2147483647, %v873_v10  ;;  %vm879_vm7 = vweird.f32 %v873_v10 }
 0xb21   :  { %v886_v49 = vor.u32 1.1754944e-38, %v885_v21  ;;  %vm884_vm9 = vcmp.eq.f32.partialorder %v883_v48, 8.507059e+37 }
 0xb25   :  { %v1416_v17 = vpop.eup %1415 }
 0xb26   :  { %v875_v18 = vmul.f32 %v1416_v17, %v873_v10  ;;  %vm880_vm6 = vweird.f32 %v1416_v17 }
 0xb27   :  { %vm881_vm8 = vmor %vm879_vm7, %vm880_vm6 }
 0xb28   :  { %v876_v19 = vsub.f32 1.0, %v875_v18  ;;  %v1024_v18 = vld [vmem:[#allocation2 + $0x30] sm:$0xff] }
 0xb29   :  { %v432_v52 = vpop.f32.mrf.mxu2 }
 0xb2a   :  { %v877_v22 = vmul.f32 %v1416_v17, %v876_v19  ;;  %v433_v33 = vadd.f32 %v432_v52, %v367_v32 }
 0xb2c   :  { %v878_v23 = vadd.f32 %v1416_v17, %v877_v22  ;;  %v450_v34 = vadd.f32 %v1611_v40, %v433_v33 }
 0xb2e   :  { %v882_v31 = vsel %vm881_vm8, %v1416_v17, %v878_v23  ;;  %468 = vst.msk [vmem:[#allocation3 + $0x28] sm:$0xff] %vm462_vm2, %v450_v34 }
 0xb2f   :  { %v887_v24 = vsel %vm884_vm9, %v886_v49, %v882_v31 }
 0xb30   :  { %v892_v25 = vmul.f32 %v890_v51, %v887_v24  ;;  %v924_v39 = vsub.f32 1.0, %v887_v24 }
 0xb31   :  { %v435_v36 = vpop.f32.mrf.mxu2 }
 0xb32   :  { %894 = vrot.lane.b32.xlu2 %v892_v25, %s1440_s8  ;;  %v436_v38 = vadd.f32 %v435_v36, %v370_v35  ;;  %v925_v54 = vmul.f32 %v924_v39, %v1845_v9 }
 0xb34   :  { %v451_v3 = vadd.f32 %v1611_v40, %v436_v38 }
 0xb35   :  { %v935_v59 = vld [vmem:[#allocation3 + $0x28] sm:$0xff] }
 0xb36   :  { %469 = vst.msk [vmem:[#allocation3 + $0x30] sm:$0xff] %vm462_vm2, %v451_v3 }
 0xb39   :  { %v438_v41 = vpop.f32.mrf.mxu2 }
 0xb3a   :  { %v439_v42 = vadd.f32 %v438_v41, %v373_v5 }
 0xb3c   :  { %v452_v43 = vadd.f32 %v1611_v40, %v439_v42 }
 0xb3d   :  { %v1026_v20 = vld [vmem:[#allocation3 + $0x30] sm:$0xff] }
 0xb3e   :  { %470 = vst.msk [vmem:[#allocation3 + $0x38] sm:$0xff] %vm462_vm2, %v452_v43 }
 0xb8c   :  { %v895_v26 = vpop.permute.xlu2 %894 }
 0xb8d   :  { %1335 = vmatmul.msk.f32.vlgmr.msrb.gmra.mxu1 %vm453_vm1, %v895_v26 }
 0xc0a   :  { %v915_v44 = vpop.f32.mrf.mxu1 }
 0xc0b   :  { %919 = vrot.lane.b32.xlu0 %v915_v44, %s1441_s25 }
 0xc7d   :  { %v920_v46 = vpop.permute.xlu0 %919 }
 0xc7e   :  { %v922_v47 = vadd.f32 %v920_v46, %v1864_v37 }
 0xc80   :  { %1417 = vtanh.f32 %v922_v47 }
 0xc86   :  { %v1418_v50 = vpop.eup %1417 }
 0xc87   :  { %927 = vrot.lane.b32.xlu1 %v1418_v50, %s1441_s25 }
 0xcf9   :  { %v928_v45 = vpop.permute.xlu1 %927 }
 0xcfa   :  { %v930_v55 = vmul.f32 %v928_v45, %v887_v24  ;;  %v1115_v45 = vld [vmem:[#allocation2 + $0x38] sm:$0xff] }
 0xcfc   :  { %v931_v57 = vadd.f32 %v930_v55, %v925_v54  ;;  %v1117_v55 = vld [vmem:[#allocation3 + $0x38] sm:$0xff] }
 0xcfe   :  { %v936_v40 = vmul.f32 %v933_v58, %v931_v57 }
 0xd00   :  { %980 = vrot.lane.b32.xlu2 %v936_v40, %s1439_s3  ;;  %1336 = vmatmul.msk.f32.vlgmr.msrb.gmra.mxu2 %vm453_vm1, %v936_v40 }
 0xd5a   :  { %v981_v30 = vpop.permute.xlu2 %980 }
 0xd83   :  { %v957_v53 = vpop.f32.mrf.mxu2 }
 0xd84   :  { %v960_v56 = vadd.f32 %v957_v53, %v935_v59 }
 0xd86   :  { %v1337_v37 = vmul.f32 -1.442695, %v960_v56 }
 0xd88   :  { %1419 = vpow2.f32 %v1337_v37 }
 0xd8e   :  { %v1420_v61 = vpop.eup %1419 }
 0xd8f   :  { %v964_v60 = vadd.f32 1.0, %v1420_v61 }
 0xd91   :  { %1421 = vrcp.f32 %v964_v60  ;;  %v976_v9 = vand.u32 2147483648, %v964_v60  ;;  %v974_v27 = vand.u32 2147483647, %v964_v60  ;;  %vm970_vm2 = vweird.f32 %v964_v60 }
 0xd93   :  { %v977_v29 = vor.u32 1.1754944e-38, %v976_v9  ;;  %vm975_vm11 = vcmp.eq.f32.partialorder %v974_v27, 8.507059e+37 }
 0xd97   :  { %v1422_v63 = vpop.eup %1421 }
 0xd98   :  { %v966_v0 = vmul.f32 %v1422_v63, %v964_v60  ;;  %vm971_vm0 = vweird.f32 %v1422_v63 }
 0xd99   :  { %vm972_vm10 = vmor %vm970_vm2, %vm971_vm0  ;;  %vm1259_vm0 = vcmask 7168  }
 0xd9a   :  { %v967_v1 = vsub.f32 1.0, %v966_v0 }
 0xd9c   :  { %v968_v2 = vmul.f32 %v1422_v63, %v967_v1 }
 0xd9e   :  { %v969_v28 = vadd.f32 %v1422_v63, %v968_v2 }
 0xda0   :  { %v973_v4 = vsel %vm972_vm10, %v1422_v63, %v969_v28 }
 0xda1   :  { %v978_v6 = vsel %vm975_vm11, %v977_v29, %v973_v4 }
 0xda2   :  { %v983_v7 = vmul.f32 %v981_v30, %v978_v6  ;;  %v1015_v13 = vsub.f32 1.0, %v978_v6 }
 0xda4   :  { %985 = vrot.lane.b32.xlu0 %v983_v7, %s1440_s8  ;;  %v1016_v15 = vmul.f32 %v1015_v13, %v936_v40 }
 0xe16   :  { %v986_v8 = vpop.permute.xlu0 %985 }
 0xe17   :  { %1338 = vmatmul.msk.f32.vlgmr.msra.gmra.mxu3 %vm453_vm1, %v986_v8 }
 0xe9a   :  { %v1006_v10 = vpop.f32.mrf.mxu3 }
 0xe9b   :  { %1010 = vrot.lane.b32.xlu1 %v1006_v10, %s1441_s25  ;;  %v1208_v10 = vld [vmem:[%s1984_s9 + $0x3] sm:$0x1] }
 0xf0d   :  { %v1011_v11 = vpop.permute.xlu1 %1010 }
 0xf0e   :  { %v1013_v12 = vadd.f32 %v1011_v11, %v935_v59  ;;  %v1211_v11 = vadd.f32 1e-05, %v1208_v10 }
 0xf10   :  { %1423 = vtanh.f32 %v1013_v12  ;;  %v1231_v12 = vld [vmem:[%s1985_s10 + $0x18] sm:$0xff]  ;;  %vm1218_vm7 = vweird.f32 %v1211_v11 }
 0xf11   :  { %1251 = vmatpush.msrb.mxu0 %v1231_v12 }
 0xf16   :  { %v1424_v62 = vpop.eup %1423 }
 0xf17   :  { %1018 = vrot.lane.b32.xlu2 %v1424_v62, %s1441_s25  ;;  %v1230_v62 = vld [vmem:[%s1985_s10 + $0x10] sm:$0xff] }
 0xf18   :  { %1252 = vmatpush.msrb.mxu0 %v1230_v62 }
 0xf71   :  { %v1019_v14 = vpop.permute.xlu2 %1018 }
 0xf72   :  { %v1021_v16 = vmul.f32 %v1019_v14, %v978_v6  ;;  %v1229_v14 = vld [vmem:[%s1985_s10 + $0x8] sm:$0xff] }
 0xf73   :  { %1253 = vmatpush.msrb.mxu0 %v1229_v14 }
 0xf74   :  { %v1022_v17 = vadd.f32 %v1021_v16, %v1016_v15  ;;  %v1228_v15 = vld [vmem:[%s1985_s10] sm:$0xff] }
 0xf75   :  { %1254 = vmatpush.msrb.mxu0 %v1228_v15 }
 0xf76   :  { %v1027_v19 = vmul.f32 %v1024_v18, %v1022_v17  ;;  %v17_v17 = vstv %s1986_s11 }
 0xf77   :  { %18 = vst [vmem:[#allocation4] sm:$0x1] %v17_v17 }
 0xf78   :  { %1071 = vrot.lane.b32.xlu0 %v1027_v19, %s1439_s3  ;;  %1339 = vmatmul.msk.f32.vlgmr.msra.gmra.mxu0 %vm453_vm1, %v1027_v19 }
 0xfea   :  { %v1072_v35 = vpop.permute.xlu0 %1071 }
 0xff5   :  { %v1048_v21 = vpop.f32.mrf.mxu0 }
 0xff6   :  { %v1051_v22 = vadd.f32 %v1048_v21, %v1026_v20 }
 0xff8   :  { %v1340_v48 = vmul.f32 -1.442695, %v1051_v22 }
 0xffa   :  { %1425 = vpow2.f32 %v1340_v48 }
0x1000   :  { %v1426_v23 = vpop.eup %1425 }
0x1001   :  { %v1055_v49 = vadd.f32 1.0, %v1426_v23 }
0x1003   :  { %1427 = vrcp.f32 %v1055_v49  ;;  %v1067_v25 = vand.u32 2147483648, %v1055_v49  ;;  %v1065_v32 = vand.u32 2147483647, %v1055_v49  ;;  %vm1061_vm13 = vweird.f32 %v1055_v49 }
0x1005   :  { %v1068_v33 = vor.u32 1.1754944e-38, %v1067_v25  ;;  %vm1066_vm15 = vcmp.eq.f32.partialorder %v1065_v32, 8.507059e+37 }
0x1009   :  { %v1428_v31 = vpop.eup %1427 }
0x100a   :  { %v1057_v51 = vmul.f32 %v1428_v31, %v1055_v49  ;;  %vm1062_vm12 = vweird.f32 %v1428_v31 }
0x100b   :  { %vm1063_vm14 = vmor %vm1061_vm13, %vm1062_vm12 }
0x100c   :  { %v1058_v24 = vsub.f32 1.0, %v1057_v51 }
0x100e   :  { %v1059_v26 = vmul.f32 %v1428_v31, %v1058_v24 }
0x1010   :  { %v1060_v52 = vadd.f32 %v1428_v31, %v1059_v26  ;;  %v1354_v26 = vld [vmem:[%s1984_s9] ss:$0 sm:$0xff] }
0x1012   :  { %v1064_v34 = vsel %vm1063_vm14, %v1428_v31, %v1060_v52  ;;  %v1353_v31 = vld [vmem:[%s1984_s9 + $0x2] ss:$0 sm:$0xff]  ;;  %v1355_v52 = vld [vmem:[%s1984_s9 + $0x1] ss:$0 sm:$0xff] }
0x1013   :  { %v1069_v36 = vsel %vm1066_vm15, %v1068_v33, %v1064_v34 }
0x1014   :  { %v1074_v38 = vmul.f32 %v1072_v35, %v1069_v36  ;;  %v1106_v44 = vsub.f32 1.0, %v1069_v36 }
0x1016   :  { %1076 = vrot.lane.b32.xlu1 %v1074_v38, %s1440_s8  ;;  %v1107_v47 = vmul.f32 %v1106_v44, %v1027_v19 }
0x1088   :  { %v1077_v3 = vpop.permute.xlu1 %1076 }
0x1089   :  { %1341 = vmatmul.msk.f32.vlgmr.msra.gmra.mxu1 %vm453_vm1, %v1077_v3 }
0x1106   :  { %v1097_v5 = vpop.f32.mrf.mxu1 }
0x1107   :  { %1101 = vrot.lane.b32.xlu2 %v1097_v5, %s1441_s25 }
0x1161   :  { %v1102_v41 = vpop.permute.xlu2 %1101 }
0x1162   :  { %v1104_v42 = vadd.f32 %v1102_v41, %v1026_v20 }
0x1164   :  { %1429 = vtanh.f32 %v1104_v42 }
0x116a   :  { %v1430_v43 = vpop.eup %1429 }
0x116b   :  { %1109 = vrot.lane.b32.xlu0 %v1430_v43, %s1441_s25 }
0x11dd   :  { %v1110_v46 = vpop.permute.xlu0 %1109 }
0x11de   :  { %v1112_v50 = vmul.f32 %v1110_v46, %v1069_v36  ;;  %v1356_v36 = vld [vmem:[#allocation4] ss:$0 sm:$0xff] }
0x11e0   :  { %v1113_v39 = vadd.f32 %v1112_v50, %v1107_v47 }
0x11e2   :  { %v1933_v54 = vmul.f32 %v1115_v45, %v1113_v39 }
0x11e4   :  { %1162 = vrot.lane.b32.xlu1 %v1933_v54, %s1439_s3  ;;  %1342 = vmatmul.msk.f32.vlgmr.msra.gmra.mxu2 %vm453_vm1, %v1933_v54 }
0x1256   :  { %v1163_v27 = vpop.permute.xlu1 %1162 }
0x1267   :  { %v1139_v57 = vpop.f32.mrf.mxu2 }
0x1268   :  { %v1142_v58 = vadd.f32 %v1139_v57, %v1117_v55 }
0x126a   :  { %v1343_v40 = vmul.f32 -1.442695, %v1142_v58 }
0x126c   :  { %1431 = vpow2.f32 %v1343_v40 }
0x1272   :  { %v1432_v59 = vpop.eup %1431 }
0x1273   :  { %v1146_v53 = vadd.f32 1.0, %v1432_v59 }
0x1275   :  { %1433 = vrcp.f32 %v1146_v53  ;;  %v1158_v60 = vand.u32 2147483648, %v1146_v53  ;;  %v1156_v0 = vand.u32 2147483647, %v1146_v53  ;;  %vm1152_vm4 = vweird.f32 %v1146_v53 }
0x1277   :  { %v1159_v9 = vor.u32 1.1754944e-38, %v1158_v60  ;;  %vm1157_vm6 = vcmp.eq.f32.partialorder %v1156_v0, 8.507059e+37 }
0x127b   :  { %v1434_v56 = vpop.eup %1433 }
0x127c   :  { %v1148_v37 = vmul.f32 %v1434_v56, %v1146_v53  ;;  %vm1153_vm3 = vweird.f32 %v1434_v56 }
0x127d   :  { %vm1154_vm5 = vmor %vm1152_vm4, %vm1153_vm3 }
0x127e   :  { %v1149_v61 = vsub.f32 1.0, %v1148_v37 }
0x1280   :  { %v1150_v63 = vmul.f32 %v1434_v56, %v1149_v61 }
0x1282   :  { %v1151_v1 = vadd.f32 %v1434_v56, %v1150_v63 }
0x1284   :  { %v1155_v2 = vsel %vm1154_vm5, %v1434_v56, %v1151_v1 }
0x1285   :  { %v1160_v28 = vsel %vm1157_vm6, %v1159_v9, %v1155_v2 }
0x1286   :  { %v1165_v29 = vmul.f32 %v1163_v27, %v1160_v28  ;;  %v1197_v22 = vsub.f32 1.0, %v1160_v28 }
0x1288   :  { %1167 = vrot.lane.b32.xlu2 %v1165_v29, %s1440_s8  ;;  %v1198_v49 = vmul.f32 %v1197_v22, %v1933_v54 }
0x12e2   :  { %v1168_v4 = vpop.permute.xlu2 %1167 }
0x12e3   :  { %1344 = vmatmul.msk.f32.vlgmr.msrb.gmra.mxu3 %vm453_vm1, %v1168_v4 }
0x1366   :  { %v1188_v30 = vpop.f32.mrf.mxu3 }
0x1367   :  { %1192 = vrot.lane.b32.xlu0 %v1188_v30, %s1441_s25 }
0x13d9   :  { %v1193_v6 = vpop.permute.xlu0 %1192 }
0x13da   :  { %v1195_v7 = vadd.f32 %v1193_v6, %v1117_v55 }
0x13dc   :  { %1435 = vtanh.f32 %v1195_v7 }
0x13dd   :  { %1437 = vrsqrt.f32 %v1211_v11 }
0x13e2   :  { %v1436_v8 = vpop.eup %1435 }
0x13e3   :  { %1200 = vrot.lane.b32.xlu1 %v1436_v8, %s1441_s25  ;;  %v1438_v13 = vpop.eup %1437 }
0x13e4   :  { %v1213_v16 = vmul.f32 %v1438_v13, %v1211_v11  ;;  %vm1219_vm8 = vweird.f32 %v1438_v13 }
0x13e5   :  { %vm1220_vm9 = vmor %vm1218_vm7, %vm1219_vm8 }
0x13e6   :  { %v1214_v18 = vmul.f32 %v1438_v13, %v1213_v16 }
0x13e8   :  { %v1215_v19 = vmul.f32 0.5, %v1214_v18 }
0x13ea   :  { %v1216_v20 = vsub.f32 1.5, %v1215_v19 }
0x13ec   :  { %v1217_v21 = vmul.f32 %v1438_v13, %v1216_v20 }
0x13ee   :  { %v1221_v48 = vsel %vm1220_vm9, %v1438_v13, %v1217_v21 }
0x13ef   :  { %v1222_v24 = vperm.slane %v1221_v48, 0 }
0x1455   :  { %v1201_v23 = vpop.permute.xlu1 %1200 }
0x1456   :  { %v1203_v51 = vmul.f32 %v1201_v23, %v1160_v28 }
0x1458   :  { %v1204_v25 = vadd.f32 %v1203_v51, %v1198_v49 }
0x145a   :  { %v1210_v32 = vsub.f32 %v1204_v25, %v1353_v31 }
0x145c   :  { %v1223_v33 = vmul.f32 %v1222_v24, %v1210_v32 }
0x145e   :  { %v1225_v34 = vmul.f32 %v1354_v26, %v1223_v33 }
0x1460   :  { %v1227_v35 = vadd.f32 %v1355_v52, %v1225_v34 }
0x1462   :  { %1345 = vmatmul.msk.f32.vlgmr.msrb.gmra.mxu0 %vm453_vm1, %v1227_v35 }
0x14df   :  { %v1256_v38 = vpop.f32.mrf.mxu0 }
0x14e0   :  { %v1257_v3 = vadd.f32 %v1356_v36, %v1256_v38 }
0x14e2   :  { %1260 = vst.msk [vmem:[%s1987_s12] sm:$0xff] %vm1259_vm0, %v1257_v3 }

</bundles_post_ra>
